<compile_context>
chip_gen: v7x
topology: tpu7x:2x2x1
jax: 0.10.0
libtpu: 0.0.40
codegen_flags: <defaults>
</compile_context>

<pallas_src>
import jax
import jax.numpy as jnp
from jax.experimental import pallas as pl
from jax.experimental.pallas import tpu as pltpu


def gravity_dyns_kernel(s_ref,
                        w1t_ref, b1_ref,
                        w2t_ref, b2_ref,
                        w3t_ref, b3_ref,
                        w4t_ref, b4_ref,
                        out_ref):
    # s: (8, TB) float32 — feature-major tile of states (batch on the lane dim).
    s = s_ref[...]
    x = s.astype(jnp.bfloat16)

    # Layer 1..3: bf16 MXU inputs, f32 accumulation, f32 bias add + ReLU (VPU),
    # then a single cast back to bf16 carried into the next dot.
    h = jnp.dot(w1t_ref[...], x, preferred_element_type=jnp.float32) + b1_ref[...]
    h = jnp.maximum(h, 0.0).astype(jnp.bfloat16)
    h = jnp.dot(w2t_ref[...], h, preferred_element_type=jnp.float32) + b2_ref[...]
    h = jnp.maximum(h, 0.0).astype(jnp.bfloat16)
    h = jnp.dot(w3t_ref[...], h, preferred_element_type=jnp.float32) + b3_ref[...]
    h = jnp.maximum(h, 0.0).astype(jnp.bfloat16)
    dv = jnp.dot(w4t_ref[...], h, preferred_element_type=jnp.float32) + b4_ref[...]  # (4, TB)

    # "Concat" = two lane-dense sublane slice stores (no XLU lane shuffles).
    out_ref[0:4, :] = s[4:8, :]   # dx = velocity part of the state
    out_ref[4:8, :] = dv          # dv = MLP output


def _round_up(x, m):
    return ((x + m - 1) // m) * m


def _num_tensorcores_per_chip():
    """2 on v7x (two TensorCores share the parallel grid axis), else 1."""
    try:
        kind = jax.devices()[0].device_kind.lower()
    except Exception:
        return 1
    return 2 if ("v7" in kind or "tpu7" in kind) else 1


def _choose_batch_tile(B, n_tc, max_tb=1024):
    """Per-generation tile choice.

    v7x (n_tc=2): one lane-aligned tile per TensorCore when the batch splits
    cleanly on 128-lane boundaries.  v5e/v6e (n_tc=1): one whole-batch tile
    (grid=1, no per-step overhead, no padding).  Tiles capped at max_tb to keep
    f32 (H, tb) intermediates comfortably inside scoped VMEM (16 MiB on v5e).
    """
    if n_tc > 1 and B % (128 * n_tc) == 0:
        tb = B // n_tc
        while tb > max_tb and tb % 256 == 0:
            tb //= 2
        return tb
    if B <= max_tb:
        return B
    return max_tb


def gravity_dyns_batched(states, params, *, block_b=None):
    """states: (B, 8) float32 -> (B, 8) float32. Batched GravityDyns forward."""
    (w1t, b1, w2t, b2, w3t, b3, w4t, b4) = params
    B, F = states.shape
    assert F == 8
    H = w1t.shape[0]

    n_tc = _num_tensorcores_per_chip()
    tb = block_b if block_b is not None else _choose_batch_tile(B, n_tc)
    if tb >= B:
        tb, Bp = B, B                       # single full-array tile (grid=1)
    else:
        tb = _round_up(tb, 128)             # multi-tile grid: lane-aligned blocks
        if tb >= B:
            tb, Bp = B, B
        else:
            Bp = _round_up(B, tb)

    # Feature-major (lane-dense) layout: batch on the 128-lane axis.
    st = states.T                           # (8, B)
    if Bp != B:
        # Fallback only — the default tile choice divides B exactly, so this
        # HBM pad copy never runs on the hot path.
        st = jnp.pad(st, ((0, 0), (0, Bp - B)))

    def resident_spec(a):
        # Full-array block + constant block index -> single DMA, stays resident
        # in VMEM across every grid step.
        return pl.BlockSpec(a.shape, lambda i: (0, 0))

    flops = 2 * Bp * (8 * H + H * H + H * H + H * 4)
    weight_bytes = sum(int(a.size) * a.dtype.itemsize for a in params)
    bytes_accessed = weight_bytes + Bp * 8 * 4 * 2   # weights + states in + out
    cost = pl.CostEstimate(flops=flops, transcendentals=0,
                           bytes_accessed=bytes_accessed)

    out_t = pl.pallas_call(
        gravity_dyns_kernel,
        out_shape=jax.ShapeDtypeStruct((8, Bp), jnp.float32),
        grid=(Bp // tb,),
        in_specs=[pl.BlockSpec((8, tb), lambda i: (0, i))]
                 + [resident_spec(a) for a in params],
        out_specs=pl.BlockSpec((8, tb), lambda i: (0, i)),
        compiler_params=pltpu.CompilerParams(
            dimension_semantics=("parallel",)),
        cost_estimate=cost,
    )(st, w1t, b1, w2t, b2, w3t, b3, w4t, b4)

    return out_t[:, :B].T


def gravity_dyns_forward(t, state, params):
    """Matches the original forward(t, state): state (8,) -> (8,). t is unused."""
    del t
    return gravity_dyns_batched(state.reshape(1, 8), params)[0]


def init_params(key, hidden_dim):
    """PyTorch-style (Kaiming-uniform-ish) init.

    Weights are stored in nn.Linear's native (out, in) layout (already the
    transposed layout the kernel wants) in bf16; biases as (out, 1) f32 columns
    that broadcast across the lane/batch dim in-kernel.
    """
    def linear(key, fan_in, fan_out):
        kw, kb = jax.random.split(key)
        bound = 1.0 / jnp.sqrt(float(fan_in))
        wt = jax.random.uniform(kw, (fan_out, fan_in), jnp.float32, -bound, bound)
        b = jax.random.uniform(kb, (fan_out, 1), jnp.float32, -bound, bound)
        return wt.astype(jnp.bfloat16), b

    k1, k2, k3, k4 = jax.random.split(key, 4)
    w1t, b1 = linear(k1, 8, hidden_dim)
    w2t, b2 = linear(k2, hidden_dim, hidden_dim)
    w3t, b3 = linear(k3, hidden_dim, hidden_dim)
    w4t, b4 = linear(k4, hidden_dim, 4)
    return (w1t, b1, w2t, b2, w3t, b3, w4t, b4)


def gravity_dyns_ref(states, params):
    """Pure-JAX reference (same bf16-input / f32-accumulate arithmetic)."""
    (w1t, b1, w2t, b2, w3t, b3, w4t, b4) = params
    x = states.astype(jnp.float32).T                    # (8, B)
    h = x.astype(jnp.bfloat16)
    h = jnp.dot(w1t, h, preferred_element_type=jnp.float32) + b1
    h = jnp.maximum(h, 0.0).astype(jnp.bfloat16)
    h = jnp.dot(w2t, h, preferred_element_type=jnp.float32) + b2
    h = jnp.maximum(h, 0.0).astype(jnp.bfloat16)
    h = jnp.dot(w3t, h, preferred_element_type=jnp.float32) + b3
    h = jnp.maximum(h, 0.0).astype(jnp.bfloat16)
    dv = jnp.dot(w4t, h, preferred_element_type=jnp.float32) + b4
    return jnp.concatenate([x[4:8, :], dv], axis=0).T   # (B, 8)


if __name__ == "__main__":
    hidden_dim = 256   # module default; fills the 256-wide MXU on v6e/v7x
    B = 256            # 2 lane-aligned tiles of 128 on v7x, 1 tile of 256 on v5e/v6e

    key = jax.random.PRNGKey(0)
    k_params, k_state = jax.random.split(key)
    params = init_params(k_params, hidden_dim)
    states = jax.random.normal(k_state, (B, 8), jnp.float32)
    t = jnp.float32(0.0)  # unused, matches forward(t, state) signature

    # Batched path.
    out_b = gravity_dyns_batched(states, params)
    jax.block_until_ready(out_b)
    ref_b = gravity_dyns_ref(states, params)
    assert out_b.shape == (B, 8)
    assert jnp.allclose(out_b, ref_b, atol=1e-2, rtol=1e-2), (
        float(jnp.max(jnp.abs(out_b - ref_b))))

    # Single-state path (original module semantics).
    out1 = gravity_dyns_forward(t, states[0], params)
    jax.block_until_ready(out1)
    assert out1.shape == (8,)
    assert jnp.allclose(out1, ref_b[0], atol=1e-2, rtol=1e-2)

    print("KERNEL_OK")
</pallas_src>

<mosaic_0001>
module attributes {stable_mosaic.version = 11 : i64} {
  func.func @gravity_dyns_kernel(%arg0: i32, %arg1: memref<8x256xf32, #tpu.memory_space<vmem>>, %arg2: memref<256x8xbf16, #tpu.memory_space<vmem>>, %arg3: memref<256x1xf32, #tpu.memory_space<vmem>>, %arg4: memref<256x256xbf16, #tpu.memory_space<vmem>>, %arg5: memref<256x1xf32, #tpu.memory_space<vmem>>, %arg6: memref<256x256xbf16, #tpu.memory_space<vmem>>, %arg7: memref<256x1xf32, #tpu.memory_space<vmem>>, %arg8: memref<4x256xbf16, #tpu.memory_space<vmem>>, %arg9: memref<4x1xf32, #tpu.memory_space<vmem>>, %arg10: memref<8x256xf32, #tpu.memory_space<vmem>>) attributes {dimension_semantics = [#tpu.dimension_semantics<parallel>], iteration_bounds = array<i64: 1>, scalar_prefetch = 0 : i64, scratch_operands = 0 : i64, tpu.core_type = #tpu.core_type<tc>, window_params = [{transform_indices = @transform_0, window_bounds = array<i64: 8, 256>}, {pipeline_mode = #tpu.pipeline_mode<synchronous>, transform_indices = @transform_1, window_bounds = array<i64: 256, 8>}, {pipeline_mode = #tpu.pipeline_mode<synchronous>, transform_indices = @transform_2, window_bounds = array<i64: 256, 1>}, {pipeline_mode = #tpu.pipeline_mode<synchronous>, transform_indices = @transform_3, window_bounds = array<i64: 256, 256>}, {pipeline_mode = #tpu.pipeline_mode<synchronous>, transform_indices = @transform_4, window_bounds = array<i64: 256, 1>}, {pipeline_mode = #tpu.pipeline_mode<synchronous>, transform_indices = @transform_5, window_bounds = array<i64: 256, 256>}, {pipeline_mode = #tpu.pipeline_mode<synchronous>, transform_indices = @transform_6, window_bounds = array<i64: 256, 1>}, {pipeline_mode = #tpu.pipeline_mode<synchronous>, transform_indices = @transform_7, window_bounds = array<i64: 4, 256>}, {pipeline_mode = #tpu.pipeline_mode<synchronous>, transform_indices = @transform_8, window_bounds = array<i64: 4, 1>}, {transform_indices = @transform_9, window_bounds = array<i64: 8, 256>}]} {
    %c0 = arith.constant 0 : index
    %c0_0 = arith.constant 0 : index
    %0 = vector.load %arg1[%c0, %c0_0] : memref<8x256xf32, #tpu.memory_space<vmem>>, vector<8x256xf32>
    %1 = arith.truncf %0 : vector<8x256xf32> to vector<8x256xbf16>
    %c0_1 = arith.constant 0 : index
    %c0_2 = arith.constant 0 : index
    %2 = vector.load %arg2[%c0_1, %c0_2] : memref<256x8xbf16, #tpu.memory_space<vmem>>, vector<256x8xbf16>
    %cst = arith.constant dense<0.000000e+00> : vector<256x256xf32>
    %3 = tpu.matmul %2, %1, %cst {dimension_numbers = #tpu.dot_dimension_numbers<[1], [0], [0], [1], [0, 0, 1, 1], [], []>} : vector<256x8xbf16>, vector<8x256xbf16>, vector<256x256xf32> -> vector<256x256xf32>
    %c0_3 = arith.constant 0 : index
    %c0_4 = arith.constant 0 : index
    %4 = vector.load %arg3[%c0_3, %c0_4] : memref<256x1xf32, #tpu.memory_space<vmem>>, vector<256x1xf32>
    %5 = vector.broadcast %4 : vector<256x1xf32> to vector<256x256xf32>
    %6 = arith.addf %3, %5 : vector<256x256xf32>
    %cst_5 = arith.constant 0.000000e+00 : f32
    %7 = vector.broadcast %cst_5 : f32 to vector<256x256xf32>
    %8 = arith.maximumf %6, %7 : vector<256x256xf32>
    %9 = arith.truncf %8 : vector<256x256xf32> to vector<256x256xbf16>
    %c0_6 = arith.constant 0 : index
    %c0_7 = arith.constant 0 : index
    %10 = vector.load %arg4[%c0_6, %c0_7] : memref<256x256xbf16, #tpu.memory_space<vmem>>, vector<256x256xbf16>
    %cst_8 = arith.constant dense<0.000000e+00> : vector<256x256xf32>
    %11 = tpu.matmul %10, %9, %cst_8 {dimension_numbers = #tpu.dot_dimension_numbers<[1], [0], [0], [1], [0, 0, 1, 1], [], []>} : vector<256x256xbf16>, vector<256x256xbf16>, vector<256x256xf32> -> vector<256x256xf32>
    %c0_9 = arith.constant 0 : index
    %c0_10 = arith.constant 0 : index
    %12 = vector.load %arg5[%c0_9, %c0_10] : memref<256x1xf32, #tpu.memory_space<vmem>>, vector<256x1xf32>
    %13 = vector.broadcast %12 : vector<256x1xf32> to vector<256x256xf32>
    %14 = arith.addf %11, %13 : vector<256x256xf32>
    %cst_11 = arith.constant 0.000000e+00 : f32
    %15 = vector.broadcast %cst_11 : f32 to vector<256x256xf32>
    %16 = arith.maximumf %14, %15 : vector<256x256xf32>
    %17 = arith.truncf %16 : vector<256x256xf32> to vector<256x256xbf16>
    %c0_12 = arith.constant 0 : index
    %c0_13 = arith.constant 0 : index
    %18 = vector.load %arg6[%c0_12, %c0_13] : memref<256x256xbf16, #tpu.memory_space<vmem>>, vector<256x256xbf16>
    %cst_14 = arith.constant dense<0.000000e+00> : vector<256x256xf32>
    %19 = tpu.matmul %18, %17, %cst_14 {dimension_numbers = #tpu.dot_dimension_numbers<[1], [0], [0], [1], [0, 0, 1, 1], [], []>} : vector<256x256xbf16>, vector<256x256xbf16>, vector<256x256xf32> -> vector<256x256xf32>
    %c0_15 = arith.constant 0 : index
    %c0_16 = arith.constant 0 : index
    %20 = vector.load %arg7[%c0_15, %c0_16] : memref<256x1xf32, #tpu.memory_space<vmem>>, vector<256x1xf32>
    %21 = vector.broadcast %20 : vector<256x1xf32> to vector<256x256xf32>
    %22 = arith.addf %19, %21 : vector<256x256xf32>
    %cst_17 = arith.constant 0.000000e+00 : f32
    %23 = vector.broadcast %cst_17 : f32 to vector<256x256xf32>
    %24 = arith.maximumf %22, %23 : vector<256x256xf32>
    %25 = arith.truncf %24 : vector<256x256xf32> to vector<256x256xbf16>
    %c0_18 = arith.constant 0 : index
    %c0_19 = arith.constant 0 : index
    %26 = vector.load %arg8[%c0_18, %c0_19] : memref<4x256xbf16, #tpu.memory_space<vmem>>, vector<4x256xbf16>
    %cst_20 = arith.constant dense<0.000000e+00> : vector<4x256xf32>
    %27 = tpu.matmul %26, %25, %cst_20 {dimension_numbers = #tpu.dot_dimension_numbers<[1], [0], [0], [1], [0, 0, 1, 1], [], []>} : vector<4x256xbf16>, vector<256x256xbf16>, vector<4x256xf32> -> vector<4x256xf32>
    %c0_21 = arith.constant 0 : index
    %c0_22 = arith.constant 0 : index
    %28 = vector.load %arg9[%c0_21, %c0_22] : memref<4x1xf32, #tpu.memory_space<vmem>>, vector<4x1xf32>
    %29 = vector.broadcast %28 : vector<4x1xf32> to vector<4x256xf32>
    %30 = arith.addf %27, %29 : vector<4x256xf32>
    %31 = vector.extract_strided_slice %0 {offsets = [4, 0], sizes = [4, 256], strides = [1, 1]} : vector<8x256xf32> to vector<4x256xf32>
    %c0_23 = arith.constant 0 : index
    %c0_24 = arith.constant 0 : index
    %32 = vector.load %arg10[%c0_23, %c0_24] : memref<8x256xf32, #tpu.memory_space<vmem>>, vector<4x256xf32>
    tpu.vector_store %arg10[%c0_23, %c0_24], %31 {strides = array<i32>} : memref<8x256xf32, #tpu.memory_space<vmem>>, vector<4x256xf32>,
    %c4 = arith.constant 4 : index
    %c0_25 = arith.constant 0 : index
    %33 = vector.load %arg10[%c4, %c0_25] : memref<8x256xf32, #tpu.memory_space<vmem>>, vector<4x256xf32>
    tpu.vector_store %arg10[%c4, %c0_25], %30 {strides = array<i32>} : memref<8x256xf32, #tpu.memory_space<vmem>>, vector<4x256xf32>,
    return
  }
  func.func @transform_0(%arg0: i32) -> (i32, i32) {
    %c0_i32 = arith.constant 0 : i32
    %c0_i32_0 = arith.constant 0 : i32
    return %c0_i32, %arg0 : i32, i32
  }
  func.func @transform_1(%arg0: i32) -> (i32, i32) {
    %c0_i32 = arith.constant 0 : i32
    %c0_i32_0 = arith.constant 0 : i32
    %c0_i32_1 = arith.constant 0 : i32
    return %c0_i32, %c0_i32_0 : i32, i32
  }
  func.func @transform_2(%arg0: i32) -> (i32, i32) {
    %c0_i32 = arith.constant 0 : i32
    %c0_i32_0 = arith.constant 0 : i32
    %c0_i32_1 = arith.constant 0 : i32
    return %c0_i32, %c0_i32_0 : i32, i32
  }
  func.func @transform_3(%arg0: i32) -> (i32, i32) {
    %c0_i32 = arith.constant 0 : i32
    %c0_i32_0 = arith.constant 0 : i32
    %c0_i32_1 = arith.constant 0 : i32
    return %c0_i32, %c0_i32_0 : i32, i32
  }
  func.func @transform_4(%arg0: i32) -> (i32, i32) {
    %c0_i32 = arith.constant 0 : i32
    %c0_i32_0 = arith.constant 0 : i32
    %c0_i32_1 = arith.constant 0 : i32
    return %c0_i32, %c0_i32_0 : i32, i32
  }
  func.func @transform_5(%arg0: i32) -> (i32, i32) {
    %c0_i32 = arith.constant 0 : i32
    %c0_i32_0 = arith.constant 0 : i32
    %c0_i32_1 = arith.constant 0 : i32
    return %c0_i32, %c0_i32_0 : i32, i32
  }
  func.func @transform_6(%arg0: i32) -> (i32, i32) {
    %c0_i32 = arith.constant 0 : i32
    %c0_i32_0 = arith.constant 0 : i32
    %c0_i32_1 = arith.constant 0 : i32
    return %c0_i32, %c0_i32_0 : i32, i32
  }
  func.func @transform_7(%arg0: i32) -> (i32, i32) {
    %c0_i32 = arith.constant 0 : i32
    %c0_i32_0 = arith.constant 0 : i32
    %c0_i32_1 = arith.constant 0 : i32
    return %c0_i32, %c0_i32_0 : i32, i32
  }
  func.func @transform_8(%arg0: i32) -> (i32, i32) {
    %c0_i32 = arith.constant 0 : i32
    %c0_i32_0 = arith.constant 0 : i32
    %c0_i32_1 = arith.constant 0 : i32
    return %c0_i32, %c0_i32_0 : i32, i32
  }
  func.func @transform_9(%arg0: i32) -> (i32, i32) {
    %c0_i32 = arith.constant 0 : i32
    %c0_i32_0 = arith.constant 0 : i32
    return %c0_i32, %arg0 : i32, i32
  }
}

</mosaic_0001>

<bundles_post_ra>
// kernel: tpu_custom_call.1
= control target key start
LH: loop header
LB: loop body
LE: loop exit
PB: predicated region body
PF: predicated region fallthrough
CT: control target
= control target key end

     0   :  { %vm391_vm0 = vcmask 1043456   ;;  %v2362_v3 = vmov 0   ;;  %vm342_vm1 = vcmask 64512   ;;  %s3100_s0 = inlined_call_operand.vmem [shape: f32[8,256], index: 0, kind: input, shape index: {}]   ;;  %s3101_s1 = inlined_call_operand.vmem [shape: bf16[256,8], index: 1, kind: input, shape index: {}]   ;;  %s3102_s2 = inlined_call_operand.vmem [shape: f32[256,1], index: 2, kind: input, shape index: {}]   ;;  %s3103_s3 = inlined_call_operand.vmem [shape: bf16[256,256], index: 3, kind: input, shape index: {}]   ;;  %s3104_s4 = inlined_call_operand.vmem [shape: f32[256,1], index: 4, kind: input, shape index: {}]   ;;  %s3105_s5 = inlined_call_operand.vmem [shape: bf16[256,256], index: 5, kind: input, shape index: {}]   ;;  %s3106_s6 = inlined_call_operand.vmem [shape: f32[256,1], index: 6, kind: input, shape index: {}]   ;;  %s3107_s7 = inlined_call_operand.vmem [shape: bf16[4,256], index: 7, kind: input, shape index: {}]   ;;  %s3108_s8 = inlined_call_operand.vmem [shape: f32[4,1], index: 8, kind: input, shape index: {}]   ;;  %s3109_s9 = inlined_call_operand.hbm [shape: f32[8,256], index: 9, kind: output, shape index: {}]  }
   0x1   :  { %v72_v0 = vld [vmem:[%s3102_s2 + $0x10] sm:$0xff]  ;;  %v70_v1 = vld [vmem:[%s3102_s2] sm:$0xff]  ;;  %v35_v2 = vld [vmem:[%s3100_s0 + $0x8] sm:$0xff]  ;;  %2225 = vset.pattern.permute.xlu1 %v2362_v3  ;;  %2224 = vset.pattern.permute.xlu0 %v2362_v3 }
   0x2   :  { %v37_v4 = vpack.c.bf16 %v35_v2, %v35_v2  ;;  %v2095_v5 = vrot.slane %v35_v2, 4  ;;  %v34_v6 = vld [vmem:[%s3100_s0] sm:$0xff]  ;;  %114 = vperm.xlu1 %2225, %v72_v0   ;;  %104 = vperm.xlu0 %2224, %v70_v1   ;;  %v73_v9 = vld [vmem:[%s3102_s2 + $0x18] sm:$0xff]  ;;  %v71_v10 = vld [vmem:[%s3102_s2 + $0x8] sm:$0xff] }
   0x3   :  { %v36_v7 = vpack.c.bf16 %v34_v6, %v34_v6  ;;  %v2094_v8 = vrot.slane %v34_v6, 4  ;;  %430 = vmatprep.mubr.bf16.mxu0 %v2362_v3  ;;  %510 = vmatprep.mubr.bf16.mxu1 %v2362_v3  ;;  %v2226_v12 = vld [vmem:[%s3101_s1] sm:$0xff]   ;;  %v75_v14 = vld [vmem:[%s3102_s2 + $0x28] sm:$0xff]  ;;  %v77_v16 = vld [vmem:[%s3102_s2 + $0x38] sm:$0xff] }
   0x4   :  { %2138 = vmatprep.subr.msk.bf16.mxu0 %vm391_vm0, %v37_v4  ;;  %2099 = vst [vmem:[#allocation2 + $0x8] sm:$0xf] %v2095_v5  ;;  %2220 = vmatprep.subr.msk.bf16.mxu1 %vm391_vm0, %v37_v4  ;;  %v2227_v13 = vld [vmem:[%s3101_s1 + $0x40] sm:$0xff]   ;;  %v76_v17 = vld [vmem:[%s3102_s2 + $0x30] sm:$0xff]  ;;  %v2228_v18 = vld [vmem:[%s3101_s1 + $0x8] sm:$0xff]  }
   0x5   :  { %v393_v11 = vsel %vm391_vm0, %v36_v7, 0  ;;  %2098 = vst [vmem:[#allocation2] sm:$0xf] %v2094_v8  ;;  %v74_v15 = vld [vmem:[%s3102_s2 + $0x20] sm:$0xff]  ;;  %v2229_v19 = vld [vmem:[%s3101_s1 + $0x48] sm:$0xff]   ;;  %v81_v22 = vld [vmem:[%s3102_s2 + $0x58] sm:$0xff] }
   0x6   :  { %399 = vmatpush1.bf16.msra.mxu0 %v393_v11  ;;  %2221 = vmatpush1.bf16.msra.mxu1 %v393_v11  ;;  %v79_v20 = vld [vmem:[%s3102_s2 + $0x48] sm:$0xff]  ;;  %v78_v21 = vld [vmem:[%s3102_s2 + $0x40] sm:$0xff]  ;;  %v80_v23 = vld [vmem:[%s3102_s2 + $0x50] sm:$0xff] }
   0x7   :  { %119 = vperm.xlu1 %2225, %v73_v9   ;;  %109 = vperm.xlu0 %2224, %v71_v10   ;;  %v2230_v24 = vld [vmem:[%s3101_s1 + $0x10] sm:$0xff]   ;;  %v83_v26 = vld [vmem:[%s3102_s2 + $0x68] sm:$0xff]  ;;  %v82_v27 = vld [vmem:[%s3102_s2 + $0x60] sm:$0xff] }
   0x8   :  { %v2231_v25 = vld [vmem:[%s3101_s1 + $0x50] sm:$0xff]   ;;  %v85_v28 = vld [vmem:[%s3102_s2 + $0x78] sm:$0xff]  ;;  %v87_v32 = vld [vmem:[%s3102_s2 + $0x88] sm:$0xff] }
   0x9   :  { %2139 = vmatmul.mubr.msk.bf16.vlgmr.msra.gmra.mrb[0].mxu0 %vm342_vm1, %v2226_v12  ;;  %2147 = vmatmul.mubr.msk.bf16.vlgmr.msra.gmra.mrb[0].mxu1 %vm342_vm1, %v2227_v13  ;;  %v84_v29 = vld [vmem:[%s3102_s2 + $0x70] sm:$0xff]  ;;  %v2232_v30 = vld [vmem:[%s3101_s1 + $0x18] sm:$0xff]   ;;  %v86_v33 = vld [vmem:[%s3102_s2 + $0x80] sm:$0xff] }
   0xa   :  { %440 = vmatprep.mubr.bf16.mxu0 %v2362_v3  ;;  %520 = vmatprep.mubr.bf16.mxu1 %v2362_v3  ;;  %v2233_v31 = vld [vmem:[%s3101_s1 + $0x58] sm:$0xff]   ;;  %v88_v35 = vld [vmem:[%s3102_s2 + $0x90] sm:$0xff]  ;;  %v2234_v36 = vld [vmem:[%s3101_s1 + $0x20] sm:$0xff]  }
   0xb   :  { %129 = vperm.xlu1 %2225, %v75_v14   ;;  %124 = vperm.xlu0 %2224, %v74_v15   ;;  %v89_v34 = vld [vmem:[%s3102_s2 + $0x98] sm:$0xff]  ;;  %v2235_v37 = vld [vmem:[%s3101_s1 + $0x60] sm:$0xff]   ;;  %v91_v38 = vld [vmem:[%s3102_s2 + $0xa8] sm:$0xff] }
   0xc   :  { %v90_v39 = vld [vmem:[%s3102_s2 + $0xa0] sm:$0xff]  ;;  %v93_v40 = vld [vmem:[%s3102_s2 + $0xb8] sm:$0xff]  ;;  %v92_v41 = vld [vmem:[%s3102_s2 + $0xb0] sm:$0xff] }
   0xd   :  { %v2236_v42 = vld [vmem:[%s3101_s1 + $0x28] sm:$0xff]   ;;  %v94_v45 = vld [vmem:[%s3102_s2 + $0xc0] sm:$0xff]  ;;  %v97_v46 = vld [vmem:[%s3102_s2 + $0xd8] sm:$0xff] }
   0xe   :  { %v2237_v43 = vld [vmem:[%s3101_s1 + $0x68] sm:$0xff]   ;;  %v96_v47 = vld [vmem:[%s3102_s2 + $0xd0] sm:$0xff]  ;;  %v98_v51 = vld [vmem:[%s3102_s2 + $0xe0] sm:$0xff] }
   0xf   :  { %139 = vperm.xlu1 %2225, %v77_v16   ;;  %134 = vperm.xlu0 %2224, %v76_v17   ;;  %v95_v44 = vld [vmem:[%s3102_s2 + $0xc8] sm:$0xff]  ;;  %v2238_v48 = vld [vmem:[%s3101_s1 + $0x30] sm:$0xff]   ;;  %v101_v52 = vld [vmem:[%s3102_s2 + $0xf8] sm:$0xff] }
  0x10   :  { %v2239_v49 = vld [vmem:[%s3101_s1 + $0x70] sm:$0xff]   ;;  %v99_v50 = vld [vmem:[%s3102_s2 + $0xe8] sm:$0xff]  ;;  %v2240_v54 = vld [vmem:[%s3101_s1 + $0x38] sm:$0xff]  }
  0x11   :  { %2140 = vmatmul.mubr.msk.bf16.gmra.mrb[4].mxu0 %vm342_vm1, %v2228_v18  ;;  %2148 = vmatmul.mubr.msk.bf16.gmra.mrb[4].mxu1 %vm342_vm1, %v2229_v19  ;;  %v100_v53 = vld [vmem:[%s3102_s2 + $0xf0] sm:$0xff]  ;;  %v2241_v55 = vld [vmem:[%s3101_s1 + $0x78] sm:$0xff]   ;;  %v720_v56 = vld [vmem:[%s3104_s4 + $0x8] sm:$0xff] }
  0x12   :  { %450 = vmatprep.mubr.bf16.mxu0 %v2362_v3  ;;  %530 = vmatprep.mubr.bf16.mxu1 %v2362_v3  ;;  %v719_v57 = vld [vmem:[%s3104_s4] sm:$0xff]  ;;  %v722_v58 = vld [vmem:[%s3104_s4 + $0x18] sm:$0xff]  ;;  %v721_v59 = vld [vmem:[%s3104_s4 + $0x10] sm:$0xff] }
  0x13   :  { %149 = vperm.xlu1 %2225, %v79_v20   ;;  %144 = vperm.xlu0 %2224, %v78_v21  }
  0x17   :  { %159 = vperm.xlu1 %2225, %v81_v22   ;;  %154 = vperm.xlu0 %2224, %v80_v23  }
  0x19   :  { %2141 = vmatmul.mubr.msk.bf16.gmra.mrb[8].mxu0 %vm342_vm1, %v2230_v24  ;;  %2149 = vmatmul.mubr.msk.bf16.gmra.mrb[8].mxu1 %vm342_vm1, %v2231_v25 }
  0x1a   :  { %460 = vmatprep.mubr.bf16.mxu0 %v2362_v3  ;;  %540 = vmatprep.mubr.bf16.mxu1 %v2362_v3 }
  0x1b   :  { %169 = vperm.xlu1 %2225, %v83_v26   ;;  %164 = vperm.xlu0 %2224, %v82_v27  }
  0x1f   :  { %179 = vperm.xlu1 %2225, %v85_v28   ;;  %174 = vperm.xlu0 %2224, %v84_v29  }
  0x21   :  { %2142 = vmatmul.mubr.msk.bf16.gmra.mrb[12].mxu0 %vm342_vm1, %v2232_v30  ;;  %2150 = vmatmul.mubr.msk.bf16.gmra.mrb[12].mxu1 %vm342_vm1, %v2233_v31 }
  0x22   :  { %470 = vmatprep.mubr.bf16.mxu0 %v2362_v3  ;;  %550 = vmatprep.mubr.bf16.mxu1 %v2362_v3 }
  0x23   :  { %189 = vperm.xlu1 %2225, %v87_v32   ;;  %184 = vperm.xlu0 %2224, %v86_v33  }
  0x27   :  { %199 = vperm.xlu1 %2225, %v89_v34   ;;  %194 = vperm.xlu0 %2224, %v88_v35  }
  0x29   :  { %2143 = vmatmul.mubr.msk.bf16.gmra.mrb[16].mxu0 %vm342_vm1, %v2234_v36  ;;  %2151 = vmatmul.mubr.msk.bf16.gmra.mrb[16].mxu1 %vm342_vm1, %v2235_v37 }
  0x2a   :  { %480 = vmatprep.mubr.bf16.mxu0 %v2362_v3  ;;  %560 = vmatprep.mubr.bf16.mxu1 %v2362_v3 }
  0x2b   :  { %209 = vperm.xlu1 %2225, %v91_v38   ;;  %204 = vperm.xlu0 %2224, %v90_v39  }
  0x2f   :  { %219 = vperm.xlu1 %2225, %v93_v40   ;;  %214 = vperm.xlu0 %2224, %v92_v41  }
  0x31   :  { %2144 = vmatmul.mubr.msk.bf16.gmra.mrb[20].mxu0 %vm342_vm1, %v2236_v42  ;;  %2152 = vmatmul.mubr.msk.bf16.gmra.mrb[20].mxu1 %vm342_vm1, %v2237_v43 }
  0x32   :  { %490 = vmatprep.mubr.bf16.mxu0 %v2362_v3  ;;  %570 = vmatprep.mubr.bf16.mxu1 %v2362_v3 }
  0x33   :  { %229 = vperm.xlu1 %2225, %v95_v44   ;;  %224 = vperm.xlu0 %2224, %v94_v45  }
  0x37   :  { %239 = vperm.xlu1 %2225, %v97_v46   ;;  %234 = vperm.xlu0 %2224, %v96_v47  }
  0x39   :  { %2145 = vmatmul.mubr.msk.bf16.gmra.mrb[24].mxu0 %vm342_vm1, %v2238_v48  ;;  %2153 = vmatmul.mubr.msk.bf16.gmra.mrb[24].mxu1 %vm342_vm1, %v2239_v49 }
  0x3a   :  { %500 = vmatprep.mubr.bf16.mxu0 %v2362_v3  ;;  %580 = vmatprep.mubr.bf16.mxu1 %v2362_v3 }
  0x3b   :  { %249 = vperm.xlu1 %2225, %v99_v50   ;;  %244 = vperm.xlu0 %2224, %v98_v51  }
  0x3f   :  { %259 = vperm.xlu1 %2225, %v101_v52   ;;  %254 = vperm.xlu0 %2224, %v100_v53  }
  0x41   :  { %2146 = vmatmul.mubr.msk.bf16.gmra.mrb[28].mxu0 %vm342_vm1, %v2240_v54  ;;  %2154 = vmatmul.mubr.msk.bf16.gmra.mrb[28].mxu1 %vm342_vm1, %v2241_v55 }
  0x43   :  { %758 = vperm.xlu1 %2225, %v720_v56   ;;  %753 = vperm.xlu0 %2224, %v719_v57  }
  0x47   :  { %768 = vperm.xlu1 %2225, %v722_v58   ;;  %763 = vperm.xlu0 %2224, %v721_v59  }
  0x48   :  { %14 = vsyncpa [#allocation3], 0  ;;  %v724_v60 = vld [vmem:[%s3104_s4 + $0x28] sm:$0xff]  ;;  %v723_v61 = vld [vmem:[%s3104_s4 + $0x20] sm:$0xff] }
  0x49   :  { %v726_v62 = vld [vmem:[%s3104_s4 + $0x38] sm:$0xff]  ;;  %v725_v63 = vld [vmem:[%s3104_s4 + $0x30] sm:$0xff]  ;;  %v728_v0 = vld [vmem:[%s3104_s4 + $0x48] sm:$0xff] }
  0x4a   :  { %v727_v1 = vld [vmem:[%s3104_s4 + $0x40] sm:$0xff]  ;;  %v730_v2 = vld [vmem:[%s3104_s4 + $0x58] sm:$0xff]  ;;  %v729_v3 = vld [vmem:[%s3104_s4 + $0x50] sm:$0xff] }
  0x4b   :  { %778 = vperm.xlu1 %2225, %v724_v60   ;;  %773 = vperm.xlu0 %2224, %v723_v61   ;;  %v732_v4 = vld [vmem:[%s3104_s4 + $0x68] sm:$0xff]  ;;  %v731_v5 = vld [vmem:[%s3104_s4 + $0x60] sm:$0xff]  ;;  %v734_v6 = vld [vmem:[%s3104_s4 + $0x78] sm:$0xff] }
  0x4c   :  { %v733_v7 = vld [vmem:[%s3104_s4 + $0x70] sm:$0xff]  ;;  %v736_v8 = vld [vmem:[%s3104_s4 + $0x88] sm:$0xff]  ;;  %v735_v9 = vld [vmem:[%s3104_s4 + $0x80] sm:$0xff] }
  0x4d   :  { %v738_v10 = vld [vmem:[%s3104_s4 + $0x98] sm:$0xff]  ;;  %v737_v11 = vld [vmem:[%s3104_s4 + $0x90] sm:$0xff]  ;;  %v740_v12 = vld [vmem:[%s3104_s4 + $0xa8] sm:$0xff] }
  0x4e   :  { %v739_v13 = vld [vmem:[%s3104_s4 + $0xa0] sm:$0xff]  ;;  %v742_v14 = vld [vmem:[%s3104_s4 + $0xb8] sm:$0xff]  ;;  %v741_v15 = vld [vmem:[%s3104_s4 + $0xb0] sm:$0xff] }
  0x4f   :  { %788 = vperm.xlu1 %2225, %v726_v62   ;;  %783 = vperm.xlu0 %2224, %v725_v63   ;;  %v744_v16 = vld [vmem:[%s3104_s4 + $0xc8] sm:$0xff]  ;;  %v743_v17 = vld [vmem:[%s3104_s4 + $0xc0] sm:$0xff]  ;;  %v746_v18 = vld [vmem:[%s3104_s4 + $0xd8] sm:$0xff] }
  0x50   :  { %v745_v19 = vld [vmem:[%s3104_s4 + $0xd0] sm:$0xff]  ;;  %v748_v20 = vld [vmem:[%s3104_s4 + $0xe8] sm:$0xff]  ;;  %v747_v21 = vld [vmem:[%s3104_s4 + $0xe0] sm:$0xff] }
  0x51   :  { %v750_v22 = vld [vmem:[%s3104_s4 + $0xf8] sm:$0xff]  ;;  %v749_v23 = vld [vmem:[%s3104_s4 + $0xf0] sm:$0xff]  ;;  %v1393_v24 = vld [vmem:[%s3106_s6 + $0x8] sm:$0xff] }
  0x52   :  { %v1392_v25 = vld [vmem:[%s3106_s6] sm:$0xff]  ;;  %v1395_v26 = vld [vmem:[%s3106_s6 + $0x18] sm:$0xff]  ;;  %v1394_v27 = vld [vmem:[%s3106_s6 + $0x10] sm:$0xff] }
  0x53   :  { %798 = vperm.xlu1 %2225, %v728_v0   ;;  %793 = vperm.xlu0 %2224, %v727_v1   ;;  %v1397_v28 = vld [vmem:[%s3106_s6 + $0x28] sm:$0xff]  ;;  %v1396_v29 = vld [vmem:[%s3106_s6 + $0x20] sm:$0xff]  ;;  %v1399_v30 = vld [vmem:[%s3106_s6 + $0x38] sm:$0xff] }
  0x54   :  { %v1398_v31 = vld [vmem:[%s3106_s6 + $0x30] sm:$0xff]  ;;  %v1401_v32 = vld [vmem:[%s3106_s6 + $0x48] sm:$0xff]  ;;  %v1400_v33 = vld [vmem:[%s3106_s6 + $0x40] sm:$0xff] }
  0x55   :  { %v1403_v34 = vld [vmem:[%s3106_s6 + $0x58] sm:$0xff]  ;;  %v1402_v35 = vld [vmem:[%s3106_s6 + $0x50] sm:$0xff]  ;;  %v1405_v36 = vld [vmem:[%s3106_s6 + $0x68] sm:$0xff] }
  0x56   :  { %v1404_v37 = vld [vmem:[%s3106_s6 + $0x60] sm:$0xff]  ;;  %v1407_v38 = vld [vmem:[%s3106_s6 + $0x78] sm:$0xff]  ;;  %v1406_v39 = vld [vmem:[%s3106_s6 + $0x70] sm:$0xff] }
  0x57   :  { %808 = vperm.xlu1 %2225, %v730_v2   ;;  %803 = vperm.xlu0 %2224, %v729_v3   ;;  %v1409_v40 = vld [vmem:[%s3106_s6 + $0x88] sm:$0xff]  ;;  %v1408_v41 = vld [vmem:[%s3106_s6 + $0x80] sm:$0xff]  ;;  %v1411_v42 = vld [vmem:[%s3106_s6 + $0x98] sm:$0xff] }
  0x58   :  { %v1410_v43 = vld [vmem:[%s3106_s6 + $0x90] sm:$0xff]  ;;  %v1413_v44 = vld [vmem:[%s3106_s6 + $0xa8] sm:$0xff]  ;;  %v1412_v45 = vld [vmem:[%s3106_s6 + $0xa0] sm:$0xff] }
  0x59   :  { %v1415_v48 = vld [vmem:[%s3106_s6 + $0xb8] sm:$0xff]  ;;  %v1414_v49 = vld [vmem:[%s3106_s6 + $0xb0] sm:$0xff]  ;;  %v1417_v50 = vld [vmem:[%s3106_s6 + $0xc8] sm:$0xff] }
  0x5a   :  { %v1416_v51 = vld [vmem:[%s3106_s6 + $0xc0] sm:$0xff]  ;;  %v1419_v54 = vld [vmem:[%s3106_s6 + $0xd8] sm:$0xff]  ;;  %v1418_v55 = vld [vmem:[%s3106_s6 + $0xd0] sm:$0xff] }
  0x5b   :  { %818 = vperm.xlu1 %2225, %v732_v4   ;;  %813 = vperm.xlu0 %2224, %v731_v5   ;;  %v1421_v58 = vld [vmem:[%s3106_s6 + $0xe8] sm:$0xff]  ;;  %v1420_v59 = vld [vmem:[%s3106_s6 + $0xe0] sm:$0xff]  ;;  %v1423_v60 = vld [vmem:[%s3106_s6 + $0xf8] sm:$0xff] }
  0x5c   :  { %v1422_v61 = vld [vmem:[%s3106_s6 + $0xf0] sm:$0xff]  ;;  %v2034_v0 = vld [vmem:[%s3108_s8] sm:$0xf]  ;;  %v2244_v1 = vld [vmem:[%s3103_s3 + $0x4] ss:$8 sps:$4 sm:$0xff]  }
  0x5d   :  { %1103 = vmatprep.mubr.bf16.mxu1 %v2244_v1 }
  0x5f   :  { %828 = vperm.xlu1 %2225, %v734_v6   ;;  %823 = vperm.xlu0 %2224, %v733_v7  }
  0x63   :  { %838 = vperm.xlu1 %2225, %v736_v8   ;;  %833 = vperm.xlu0 %2224, %v735_v9  }
  0x67   :  { %848 = vperm.xlu1 %2225, %v738_v10   ;;  %843 = vperm.xlu0 %2224, %v737_v11  }
  0x6b   :  { %858 = vperm.xlu1 %2225, %v740_v12   ;;  %853 = vperm.xlu0 %2224, %v739_v13  }
  0x6f   :  { %868 = vperm.xlu1 %2225, %v742_v14   ;;  %863 = vperm.xlu0 %2224, %v741_v15  }
  0x73   :  { %878 = vperm.xlu1 %2225, %v744_v16   ;;  %873 = vperm.xlu0 %2224, %v743_v17  }
  0x77   :  { %888 = vperm.xlu1 %2225, %v746_v18   ;;  %883 = vperm.xlu0 %2224, %v745_v19  }
  0x7b   :  { %898 = vperm.xlu1 %2225, %v748_v20   ;;  %893 = vperm.xlu0 %2224, %v747_v21  }
  0x7f   :  { %908 = vperm.xlu1 %2225, %v750_v22   ;;  %903 = vperm.xlu0 %2224, %v749_v23  }
  0x81   :  { %v2763_v46 = vpop.permute.xlu1 %114  ;;  %v105_v47 = vpop.permute.xlu0 %104 }
  0x83   :  { %1431 = vperm.xlu1 %2225, %v1393_v24   ;;  %1426 = vperm.xlu0 %2224, %v1392_v25  }
  0x86   :  { %v2777_v52 = vpop.permute.xlu1 %119  ;;  %v110_v53 = vpop.permute.xlu0 %109 }
  0x87   :  { %1441 = vperm.xlu1 %2225, %v1395_v26   ;;  %1436 = vperm.xlu0 %2224, %v1394_v27  }
  0x8a   :  { %v2785_v56 = vpop.permute.xlu1 %129  ;;  %v2787_v57 = vpop.permute.xlu0 %124 }
  0x8b   :  { %1451 = vperm.xlu1 %2225, %v1397_v28   ;;  %1446 = vperm.xlu0 %2224, %v1396_v29  }
  0x8e   :  { %v2801_v62 = vpop.permute.xlu1 %139  ;;  %v2803_v63 = vpop.permute.xlu0 %134 }
  0x8f   :  { %1461 = vperm.xlu1 %2225, %v1399_v30   ;;  %1456 = vperm.xlu0 %2224, %v1398_v31  }
  0x92   :  { %v2811_v2 = vpop.permute.xlu1 %149  ;;  %v2813_v3 = vpop.permute.xlu0 %144 }
  0x93   :  { %1471 = vperm.xlu1 %2225, %v1401_v32   ;;  %1466 = vperm.xlu0 %2224, %v1400_v33  }
  0x96   :  { %v2815_v4 = vpop.permute.xlu1 %159  ;;  %v2817_v5 = vpop.permute.xlu0 %154 }
  0x97   :  { %1481 = vperm.xlu1 %2225, %v1403_v34   ;;  %1476 = vperm.xlu0 %2224, %v1402_v35  }
  0x9a   :  { %v2819_v6 = vpop.permute.xlu1 %169  ;;  %v2821_v7 = vpop.permute.xlu0 %164 }
  0x9b   :  { %1491 = vperm.xlu1 %2225, %v1405_v36   ;;  %1486 = vperm.xlu0 %2224, %v1404_v37  }
  0x9e   :  { %v2823_v8 = vpop.permute.xlu1 %179  ;;  %v2825_v9 = vpop.permute.xlu0 %174 }
  0x9f   :  { %1501 = vperm.xlu1 %2225, %v1407_v38   ;;  %1496 = vperm.xlu0 %2224, %v1406_v39  }
  0xa2   :  { %v190_v10 = vpop.permute.xlu1 %189  ;;  %v185_v11 = vpop.permute.xlu0 %184 }
  0xa3   :  { %1511 = vperm.xlu1 %2225, %v1409_v40   ;;  %1506 = vperm.xlu0 %2224, %v1408_v41  }
  0xa6   :  { %v200_v34 = vpop.permute.xlu1 %199  ;;  %v195_v35 = vpop.permute.xlu0 %194 }
  0xa7   :  { %1521 = vperm.xlu1 %2225, %v1411_v42   ;;  %1516 = vperm.xlu0 %2224, %v1410_v43  }
  0xab   :  { %1531 = vperm.xlu1 %2225, %v1413_v44   ;;  %1526 = vperm.xlu0 %2224, %v1412_v45  }
  0xaf   :  { %1541 = vperm.xlu1 %2225, %v1415_v48   ;;  %1536 = vperm.xlu0 %2224, %v1414_v49  }
  0xb3   :  { %1551 = vperm.xlu1 %2225, %v1417_v50   ;;  %1546 = vperm.xlu0 %2224, %v1416_v51  }
  0xb7   :  { %1561 = vperm.xlu1 %2225, %v1419_v54   ;;  %1556 = vperm.xlu0 %2224, %v1418_v55  }
  0xbb   :  { %1571 = vperm.xlu1 %2225, %v1421_v58   ;;  %1566 = vperm.xlu0 %2224, %v1420_v59  }
  0xbf   :  { %1581 = vperm.xlu1 %2225, %v1423_v60   ;;  %1576 = vperm.xlu0 %2224, %v1422_v61  }
  0xc3   :  { %2037 = vperm.xlu0 %2224, %v2034_v0  }
  0xdc   :  { %v432_v12 = vpop.f32.mrb[0].mxu0  ;;  %v512_v13 = vpop.f32.mrb[0].mxu1 }
  0xdd   :  { %v433_v14 = vadd.f32 %v432_v12, %v105_v47  ;;  %v434_v15 = vpop.f32.mrb[1].mxu0  ;;  %v513_v16 = vadd.f32 %v512_v13, %v185_v11  ;;  %v514_v17 = vpop.f32.mrb[1].mxu1 }
  0xde   :  { %v435_v18 = vadd.f32 %v434_v15, %v105_v47  ;;  %v436_v19 = vpop.f32.mrb[2].mxu0  ;;  %v515_v20 = vadd.f32 %v514_v17, %v185_v11  ;;  %v516_v24 = vpop.f32.mrb[2].mxu1 }
  0xdf   :  { %v437_v21 = vadd.f32 %v436_v19, %v110_v53  ;;  %v438_v22 = vpop.f32.mrb[3].mxu0  ;;  %v591_v25 = vmax.f32 %v433_v14, 0.0  ;;  %v623_v27 = vmax.f32 %v513_v16, 0.0  ;;  %v517_v28 = vadd.f32 %v516_v24, %v190_v10  ;;  %v518_v29 = vpop.f32.mrb[3].mxu1 }
  0xe0   :  { %v439_v23 = vadd.f32 %v438_v22, %v110_v53  ;;  %v592_v30 = vmax.f32 %v435_v18, 0.0  ;;  %v624_v32 = vmax.f32 %v515_v20, 0.0  ;;  %v519_v33 = vadd.f32 %v518_v29, %v190_v10  ;;  %v210_v13 = vpop.permute.xlu1 %209  ;;  %v205_v14 = vpop.permute.xlu0 %204 }
  0xe1   :  { %v593_v26 = vmax.f32 %v437_v21, 0.0  ;;  %v625_v37 = vmax.f32 %v517_v28, 0.0 }
  0xe2   :  { %v594_v31 = vmax.f32 %v439_v23, 0.0  ;;  %v626_v40 = vmax.f32 %v519_v33, 0.0 }
  0xe3   :  { %v655_v36 = vpack.c.bf16 %v593_v26, %v591_v25  ;;  %v2828_v44 = vpack.c.bf16 %v625_v37, %v623_v27 }
  0xe4   :  { %v656_v38 = vpack.c.bf16 %v594_v31, %v592_v30  ;;  %v442_v39 = vpop.f32.mrb[4].mxu0  ;;  %v522_v41 = vpop.f32.mrb[4].mxu1  ;;  %v2831_v50 = vpack.c.bf16 %v626_v40, %v624_v32 }
  0xe5   :  { %v443_v42 = vadd.f32 %v442_v39, %v2763_v46  ;;  %v444_v43 = vpop.f32.mrb[5].mxu0  ;;  %v523_v45 = vadd.f32 %v522_v41, %v195_v35  ;;  %v524_v47 = vpop.f32.mrb[5].mxu1 }
  0xe6   :  { %v445_v48 = vadd.f32 %v444_v43, %v2763_v46  ;;  %v446_v49 = vpop.f32.mrb[6].mxu0  ;;  %1071 = vmatprep.subr.bf16.mxu1 %v656_v38  ;;  %v525_v51 = vadd.f32 %v524_v47, %v195_v35  ;;  %v526_v58 = vpop.f32.mrb[6].mxu1 }
  0xe7   :  { %v447_v53 = vadd.f32 %v446_v49, %v2777_v52  ;;  %v448_v54 = vpop.f32.mrb[7].mxu0  ;;  %1072 = vmatpush1.bf16.msra.mxu1 %v655_v36  ;;  %v595_v59 = vmax.f32 %v443_v42, 0.0  ;;  %v627_v61 = vmax.f32 %v523_v45, 0.0  ;;  %v527_v0 = vadd.f32 %v526_v58, %v200_v34  ;;  %v528_v1 = vpop.f32.mrb[7].mxu1 }
  0xe8   :  { %v449_v55 = vadd.f32 %v448_v54, %v2777_v52  ;;  %v596_v10 = vmax.f32 %v445_v48, 0.0  ;;  %v628_v46 = vmax.f32 %v525_v51, 0.0  ;;  %v529_v12 = vadd.f32 %v528_v1, %v200_v34  ;;  %v220_v41 = vpop.permute.xlu1 %219  ;;  %v215_v42 = vpop.permute.xlu0 %214 }
  0xe9   :  { %v597_v60 = vmax.f32 %v447_v53, 0.0  ;;  %v629_v16 = vmax.f32 %v527_v0, 0.0 }
  0xea   :  { %v598_v11 = vmax.f32 %v449_v55, 0.0  ;;  %v630_v19 = vmax.f32 %v529_v12, 0.0 }
  0xeb   :  { %v657_v15 = vpack.c.bf16 %v597_v60, %v595_v59  ;;  %v2836_v22 = vpack.c.bf16 %v629_v16, %v627_v61 }
  0xec   :  { %v658_v17 = vpack.c.bf16 %v598_v11, %v596_v10  ;;  %v452_v18 = vpop.f32.mrb[8].mxu0  ;;  %v532_v20 = vpop.f32.mrb[8].mxu1  ;;  %v2839_v27 = vpack.c.bf16 %v630_v19, %v628_v46 }
  0xed   :  { %v453_v52 = vadd.f32 %v452_v18, %v2787_v57  ;;  %v454_v21 = vpop.f32.mrb[9].mxu0  ;;  %v533_v23 = vadd.f32 %v532_v20, %v205_v14  ;;  %v534_v24 = vpop.f32.mrb[9].mxu1 }
  0xee   :  { %v455_v25 = vadd.f32 %v454_v21, %v2787_v57  ;;  %v456_v26 = vpop.f32.mrb[10].mxu0  ;;  %1073 = vmatprep.subr.bf16.mxu1 %v658_v17  ;;  %v535_v28 = vadd.f32 %v534_v24, %v205_v14  ;;  %v536_v32 = vpop.f32.mrb[10].mxu1 }
  0xef   :  { %v457_v29 = vadd.f32 %v456_v26, %v2785_v56  ;;  %v458_v30 = vpop.f32.mrb[11].mxu0  ;;  %1074 = vmatpush1.bf16.msra.mxu1 %v657_v15  ;;  %v599_v33 = vmax.f32 %v453_v52, 0.0  ;;  %v631_v35 = vmax.f32 %v533_v23, 0.0  ;;  %v537_v36 = vadd.f32 %v536_v32, %v210_v13  ;;  %v538_v37 = vpop.f32.mrb[11].mxu1 }
  0xf0   :  { %v459_v31 = vadd.f32 %v458_v30, %v2785_v56  ;;  %v600_v38 = vmax.f32 %v455_v25, 0.0  ;;  %v632_v57 = vmax.f32 %v535_v28, 0.0  ;;  %v539_v40 = vadd.f32 %v538_v37, %v210_v13  ;;  %v225_v52 = vpop.permute.xlu0 %224 }
  0xf1   :  { %v601_v34 = vmax.f32 %v457_v29, 0.0  ;;  %v633_v45 = vmax.f32 %v537_v36, 0.0 }
  0xf2   :  { %v602_v39 = vmax.f32 %v459_v31, 0.0  ;;  %v634_v48 = vmax.f32 %v539_v40, 0.0 }
  0xf3   :  { %v659_v43 = vpack.c.bf16 %v601_v34, %v599_v33  ;;  %v2843_v53 = vpack.c.bf16 %v633_v45, %v631_v35 }
  0xf4   :  { %v660_v47 = vpack.c.bf16 %v602_v39, %v600_v38  ;;  %v462_v49 = vpop.f32.mrb[12].mxu0  ;;  %v542_v51 = vpop.f32.mrb[12].mxu1  ;;  %v2846_v59 = vpack.c.bf16 %v634_v48, %v632_v57 }
  0xf5   :  { %v463_v56 = vadd.f32 %v462_v49, %v2803_v63  ;;  %v543_v54 = vadd.f32 %v542_v51, %v215_v42  ;;  %v464_v55 = vpop.f32.mrb[13].mxu0  ;;  %v544_v58 = vpop.f32.mrb[13].mxu1 }
  0xf6   :  { %v465_v60 = vadd.f32 %v464_v55, %v2803_v63  ;;  %v545_v61 = vadd.f32 %v544_v58, %v215_v42  ;;  %v466_v0 = vpop.f32.mrb[14].mxu0  ;;  %v546_v1 = vpop.f32.mrb[14].mxu1  ;;  %1075 = vmatprep.subr.bf16.mxu1 %v660_v47 }
  0xf7   :  { %v635_v10 = vmax.f32 %v543_v54, 0.0  ;;  %v467_v11 = vadd.f32 %v466_v0, %v2801_v62  ;;  %v547_v46 = vadd.f32 %v546_v1, %v220_v41  ;;  %1076 = vmatpush1.bf16.msra.mxu1 %v659_v43  ;;  %v603_v12 = vmax.f32 %v463_v56, 0.0  ;;  %v468_v14 = vpop.f32.mrb[15].mxu0  ;;  %v548_v15 = vpop.f32.mrb[15].mxu1 }
  0xf8   :  { %v636_v13 = vmax.f32 %v545_v61, 0.0  ;;  %v469_v18 = vadd.f32 %v468_v14, %v2801_v62  ;;  %v549_v19 = vadd.f32 %v548_v15, %v220_v41  ;;  %v604_v20 = vmax.f32 %v465_v60, 0.0  ;;  %v230_v63 = vpop.permute.xlu1 %229  ;;  %v235_v56 = vpop.permute.xlu0 %234 }
  0xf9   :  { %v605_v16 = vmax.f32 %v467_v11, 0.0  ;;  %v637_v17 = vmax.f32 %v547_v46, 0.0 }
  0xfa   :  { %v606_v24 = vmax.f32 %v469_v18, 0.0  ;;  %v638_v25 = vmax.f32 %v549_v19, 0.0 }
  0xfb   :  { %v661_v21 = vpack.c.bf16 %v605_v16, %v603_v12  ;;  %v2851_v23 = vpack.c.bf16 %v637_v17, %v635_v10 }
  0xfc   :  { %v472_v26 = vpop.f32.mrb[16].mxu0  ;;  %v552_v28 = vpop.f32.mrb[16].mxu1  ;;  %v662_v29 = vpack.c.bf16 %v606_v24, %v604_v20  ;;  %v2853_v30 = vpack.c.bf16 %v638_v25, %v636_v13 }
  0xfd   :  { %v473_v31 = vadd.f32 %v472_v26, %v2813_v3  ;;  %v553_v32 = vadd.f32 %v552_v28, %v225_v52  ;;  %v474_v33 = vpop.f32.mrb[17].mxu0  ;;  %v554_v34 = vpop.f32.mrb[17].mxu1 }
  0xfe   :  { %v475_v62 = vadd.f32 %v474_v33, %v2813_v3  ;;  %v555_v35 = vadd.f32 %v554_v34, %v225_v52  ;;  %v476_v36 = vpop.f32.mrb[18].mxu0  ;;  %v556_v37 = vpop.f32.mrb[18].mxu1  ;;  %1077 = vmatprep.subr.bf16.mxu1 %v662_v29 }
  0xff   :  { %v477_v38 = vadd.f32 %v476_v36, %v2811_v2  ;;  %v557_v39 = vadd.f32 %v556_v37, %v230_v63  ;;  %v607_v57 = vmax.f32 %v473_v31, 0.0  ;;  %v639_v40 = vmax.f32 %v553_v32, 0.0  ;;  %v478_v41 = vpop.f32.mrb[19].mxu0  ;;  %v558_v42 = vpop.f32.mrb[19].mxu1  ;;  %1078 = vmatpush1.bf16.msra.mxu1 %v661_v21 }
 0x100   :  { %v479_v47 = vadd.f32 %v478_v41, %v2811_v2  ;;  %v559_v48 = vadd.f32 %v558_v42, %v230_v63  ;;  %v608_v49 = vmax.f32 %v475_v62, 0.0  ;;  %v640_v51 = vmax.f32 %v555_v35, 0.0  ;;  %v240_v3 = vpop.permute.xlu1 %239  ;;  %v245_v31 = vpop.permute.xlu0 %244 }
 0x101   :  { %v609_v43 = vmax.f32 %v477_v38, 0.0  ;;  %v641_v45 = vmax.f32 %v557_v39, 0.0 }
 0x102   :  { %v610_v58 = vmax.f32 %v479_v47, 0.0  ;;  %v642_v60 = vmax.f32 %v559_v48, 0.0 }
 0x103   :  { %v663_v54 = vpack.c.bf16 %v609_v43, %v607_v57  ;;  %v2859_v55 = vpack.c.bf16 %v641_v45, %v639_v40 }
 0x104   :  { %v482_v61 = vpop.f32.mrb[20].mxu0  ;;  %v562_v0 = vpop.f32.mrb[20].mxu1  ;;  %v664_v1 = vpack.c.bf16 %v610_v58, %v608_v49  ;;  %v2861_v10 = vpack.c.bf16 %v642_v60, %v640_v51 }
 0x105   :  { %v483_v11 = vadd.f32 %v482_v61, %v2817_v5  ;;  %v563_v46 = vadd.f32 %v562_v0, %v235_v56  ;;  %v484_v12 = vpop.f32.mrb[21].mxu0  ;;  %v564_v2 = vpop.f32.mrb[21].mxu1 }
 0x106   :  { %v485_v13 = vadd.f32 %v484_v12, %v2817_v5  ;;  %v565_v14 = vadd.f32 %v564_v2, %v235_v56  ;;  %v486_v15 = vpop.f32.mrb[22].mxu0  ;;  %v566_v16 = vpop.f32.mrb[22].mxu1  ;;  %1079 = vmatprep.subr.bf16.mxu1 %v664_v1 }
 0x107   :  { %v487_v17 = vadd.f32 %v486_v15, %v2815_v4  ;;  %v567_v18 = vadd.f32 %v566_v16, %v240_v3  ;;  %v611_v19 = vmax.f32 %v483_v11, 0.0  ;;  %v643_v20 = vmax.f32 %v563_v46, 0.0  ;;  %v488_v63 = vpop.f32.mrb[23].mxu0  ;;  %v568_v52 = vpop.f32.mrb[23].mxu1  ;;  %1080 = vmatpush1.bf16.msra.mxu1 %v663_v54 }
 0x108   :  { %v489_v25 = vadd.f32 %v488_v63, %v2815_v4  ;;  %v569_v26 = vadd.f32 %v568_v52, %v240_v3  ;;  %v612_v28 = vmax.f32 %v485_v13, 0.0  ;;  %v644_v29 = vmax.f32 %v565_v14, 0.0  ;;  %v250_v5 = vpop.permute.xlu1 %249  ;;  %v255_v11 = vpop.permute.xlu0 %254 }
 0x109   :  { %v613_v21 = vmax.f32 %v487_v17, 0.0  ;;  %v645_v24 = vmax.f32 %v567_v18, 0.0 }
 0x10a   :  { %v614_v34 = vmax.f32 %v489_v25, 0.0  ;;  %v646_v62 = vmax.f32 %v569_v26, 0.0 }
 0x10b   :  { %v665_v32 = vpack.c.bf16 %v613_v21, %v611_v19  ;;  %v2867_v33 = vpack.c.bf16 %v645_v24, %v643_v20 }
 0x10c   :  { %v492_v35 = vpop.f32.mrb[24].mxu0  ;;  %v572_v36 = vpop.f32.mrb[24].mxu1  ;;  %v666_v37 = vpack.c.bf16 %v614_v34, %v612_v28  ;;  %v2869_v38 = vpack.c.bf16 %v646_v62, %v644_v29 }
 0x10d   :  { %v493_v39 = vadd.f32 %v492_v35, %v2821_v7  ;;  %v573_v57 = vadd.f32 %v572_v36, %v245_v31  ;;  %v494_v40 = vpop.f32.mrb[25].mxu0  ;;  %v574_v4 = vpop.f32.mrb[25].mxu1 }
 0x10e   :  { %v495_v41 = vadd.f32 %v494_v40, %v2821_v7  ;;  %v575_v42 = vadd.f32 %v574_v4, %v245_v31  ;;  %v496_v43 = vpop.f32.mrb[26].mxu0  ;;  %v576_v45 = vpop.f32.mrb[26].mxu1  ;;  %1081 = vmatprep.subr.bf16.mxu1 %v666_v37 }
 0x10f   :  { %v497_v47 = vadd.f32 %v496_v43, %v2819_v6  ;;  %v577_v48 = vadd.f32 %v576_v45, %v250_v5  ;;  %v615_v49 = vmax.f32 %v493_v39, 0.0  ;;  %v647_v51 = vmax.f32 %v573_v57, 0.0  ;;  %v498_v3 = vpop.f32.mrb[27].mxu0  ;;  %v578_v56 = vpop.f32.mrb[27].mxu1  ;;  %1082 = vmatpush1.bf16.msra.mxu1 %v665_v32  ;;  %v2265_v43 = vld [vmem:[%s3103_s3 + $0x70] ss:$8 sps:$4 sm:$0xff]  }
 0x110   :  { %v499_v60 = vadd.f32 %v498_v3, %v2819_v6  ;;  %v579_v61 = vadd.f32 %v578_v56, %v250_v5  ;;  %v616_v0 = vmax.f32 %v495_v41, 0.0  ;;  %v648_v1 = vmax.f32 %v575_v42, 0.0  ;;  %v260_v7 = vpop.permute.xlu1 %259  ;;  %v2263_v42 = vld [vmem:[%s3103_s3 + $0x74] ss:$8 sps:$4 sm:$0xff]   ;;  %v2266_v45 = vld [vmem:[%s3103_s3 + $0x84] ss:$8 sps:$4 sm:$0xff]  }
 0x111   :  { %v617_v54 = vmax.f32 %v497_v47, 0.0  ;;  %v649_v58 = vmax.f32 %v577_v48, 0.0  ;;  %v2268_v47 = vld [vmem:[%s3103_s3 + $0x80] ss:$8 sps:$4 sm:$0xff]   ;;  %v2269_v48 = vld [vmem:[%s3103_s3 + $0x94] ss:$8 sps:$4 sm:$0xff]  }
 0x112   :  { %v618_v2 = vmax.f32 %v499_v60, 0.0  ;;  %v650_v13 = vmax.f32 %v579_v61, 0.0  ;;  %v2274_v3 = vld [vmem:[%s3103_s3 + $0xa0] ss:$8 sps:$4 sm:$0xff]   ;;  %v2275_v56 = vld [vmem:[%s3103_s3 + $0xb4] ss:$8 sps:$4 sm:$0xff]  }
 0x113   :  { %v667_v46 = vpack.c.bf16 %v617_v54, %v615_v49  ;;  %v683_v12 = vpack.c.bf16 %v649_v58, %v647_v51  ;;  %v2271_v49 = vld [vmem:[%s3103_s3 + $0x90] ss:$8 sps:$4 sm:$0xff]   ;;  %v2272_v51 = vld [vmem:[%s3103_s3 + $0xa4] ss:$8 sps:$4 sm:$0xff]   ;;  %v2280_v60 = vld [vmem:[%s3103_s3 + $0xc0] ss:$8 sps:$4 sm:$0xff]  }
 0x114   :  { %v502_v14 = vpop.f32.mrb[28].mxu0  ;;  %v582_v15 = vpop.f32.mrb[28].mxu1  ;;  %v668_v16 = vpack.c.bf16 %v618_v2, %v616_v0  ;;  %v684_v17 = vpack.c.bf16 %v650_v13, %v648_v1  ;;  %v2277_v54 = vld [vmem:[%s3103_s3 + $0xb0] ss:$8 sps:$4 sm:$0xff]   ;;  %v2278_v58 = vld [vmem:[%s3103_s3 + $0xc4] ss:$8 sps:$4 sm:$0xff]  }
 0x115   :  { %v503_v18 = vadd.f32 %v502_v14, %v2825_v9  ;;  %v583_v19 = vadd.f32 %v582_v15, %v255_v11  ;;  %v504_v20 = vpop.f32.mrb[29].mxu0  ;;  %v584_v63 = vpop.f32.mrb[29].mxu1  ;;  %v2281_v61 = vld [vmem:[%s3103_s3 + $0xd4] ss:$8 sps:$4 sm:$0xff]   ;;  %v2283_v0 = vld [vmem:[%s3103_s3 + $0xd0] ss:$8 sps:$4 sm:$0xff]  }
 0x116   :  { %v505_v6 = vadd.f32 %v504_v20, %v2825_v9  ;;  %v585_v52 = vadd.f32 %v584_v63, %v255_v11  ;;  %v506_v21 = vpop.f32.mrb[30].mxu0  ;;  %v586_v24 = vpop.f32.mrb[30].mxu1  ;;  %1083 = vmatprep.subr.bf16.mxu1 %v668_v16  ;;  %v2284_v1 = vld [vmem:[%s3103_s3 + $0xe4] ss:$8 sps:$4 sm:$0xff]   ;;  %v2287_v11 = vld [vmem:[%s3103_s3 + $0xf4] ss:$8 sps:$4 sm:$0xff]  }
 0x117   :  { %v507_v25 = vadd.f32 %v506_v21, %v2823_v8  ;;  %v587_v26 = vadd.f32 %v586_v24, %v260_v7  ;;  %v619_v28 = vmax.f32 %v503_v18, 0.0  ;;  %v651_v29 = vmax.f32 %v583_v19, 0.0  ;;  %v508_v5 = vpop.f32.mrb[31].mxu0  ;;  %v588_v31 = vpop.f32.mrb[31].mxu1  ;;  %1084 = vmatpush1.bf16.msra.mxu1 %v667_v46  ;;  %v2289_v46 = vld [vmem:[%s3103_s3 + $0xf0] ss:$8 sps:$4 sm:$0xff]  }
 0x118   :  { %v509_v62 = vadd.f32 %v508_v5, %v2823_v8  ;;  %v589_v35 = vadd.f32 %v588_v31, %v260_v7  ;;  %v620_v36 = vmax.f32 %v505_v6, 0.0  ;;  %v652_v37 = vmax.f32 %v585_v52, 0.0  ;;  %v2242_v8 = vld [vmem:[%s3103_s3] ss:$8 sps:$4 sm:$0xff]   ;;  %v759_v15 = vpop.permute.xlu1 %758  ;;  %v2292_v20 = vld [vmem:[%s3105_s5 + $0x4] ss:$8 sps:$4 sm:$0xff]  }
 0x119   :  { %v621_v32 = vmax.f32 %v507_v25, 0.0  ;;  %v653_v34 = vmax.f32 %v587_v26, 0.0  ;;  %v2286_v7 = vld [vmem:[%s3103_s3 + $0xe0] ss:$8 sps:$4 sm:$0xff]   ;;  %1776 = vmatprep.mubr.bf16.mxu0 %v2292_v20 }
 0x11a   :  { %v622_v57 = vmax.f32 %v509_v62, 0.0  ;;  %v654_v40 = vmax.f32 %v589_v35, 0.0 }
 0x11b   :  { %v669_v9 = vpack.c.bf16 %v621_v32, %v619_v28  ;;  %v685_v39 = vpack.c.bf16 %v653_v34, %v651_v29 }
 0x11c   :  { %v670_v4 = vpack.c.bf16 %v622_v57, %v620_v36  ;;  %v686_v41 = vpack.c.bf16 %v654_v40, %v652_v37  ;;  %v769_v32 = vpop.permute.xlu1 %768 }
 0x11e   :  { %1085 = vmatprep.subr.bf16.mxu1 %v670_v4 }
 0x11f   :  { %1086 = vmatpush1.bf16.msra.mxu1 %v669_v9 }
 0x120   :  { %1087 = vmatprep.subr.bf16.mxu1 %v2831_v50  ;;  %v2247_v50 = vld [vmem:[%s3103_s3 + $0x10] ss:$8 sps:$4 sm:$0xff]  }
 0x123   :  { %1088 = vmatpush1.bf16.msra.mxu1 %v2828_v44  ;;  %v2245_v44 = vld [vmem:[%s3103_s3 + $0x14] ss:$8 sps:$4 sm:$0xff]  }
 0x124   :  { %1089 = vmatprep.subr.bf16.mxu1 %v2839_v27  ;;  %v2250_v27 = vld [vmem:[%s3103_s3 + $0x20] ss:$8 sps:$4 sm:$0xff]  }
 0x127   :  { %1090 = vmatpush1.bf16.msra.mxu1 %v2836_v22  ;;  %v2248_v22 = vld [vmem:[%s3103_s3 + $0x24] ss:$8 sps:$4 sm:$0xff]  }
 0x128   :  { %1091 = vmatprep.subr.bf16.mxu1 %v2846_v59  ;;  %v2253_v59 = vld [vmem:[%s3103_s3 + $0x30] ss:$8 sps:$4 sm:$0xff]  }
 0x12b   :  { %1092 = vmatpush1.bf16.msra.mxu1 %v2843_v53  ;;  %v2251_v53 = vld [vmem:[%s3103_s3 + $0x34] ss:$8 sps:$4 sm:$0xff]  }
 0x12c   :  { %1093 = vmatprep.subr.bf16.mxu1 %v2853_v30  ;;  %v2256_v30 = vld [vmem:[%s3103_s3 + $0x40] ss:$8 sps:$4 sm:$0xff]  }
 0x12f   :  { %1094 = vmatpush1.bf16.msra.mxu1 %v2851_v23  ;;  %v2254_v23 = vld [vmem:[%s3103_s3 + $0x44] ss:$8 sps:$4 sm:$0xff]  }
 0x130   :  { %1095 = vmatprep.subr.bf16.mxu1 %v2861_v10  ;;  %v2259_v10 = vld [vmem:[%s3103_s3 + $0x50] ss:$8 sps:$4 sm:$0xff]  }
 0x133   :  { %1096 = vmatpush1.bf16.msra.mxu1 %v2859_v55  ;;  %v2257_v55 = vld [vmem:[%s3103_s3 + $0x54] ss:$8 sps:$4 sm:$0xff]  }
 0x134   :  { %1097 = vmatprep.subr.bf16.mxu1 %v2869_v38  ;;  %v2262_v38 = vld [vmem:[%s3103_s3 + $0x60] ss:$8 sps:$4 sm:$0xff]  }
 0x137   :  { %1098 = vmatpush1.bf16.msra.mxu1 %v2867_v33  ;;  %v2260_v33 = vld [vmem:[%s3103_s3 + $0x64] ss:$8 sps:$4 sm:$0xff]  }
 0x138   :  { %1099 = vmatprep.subr.bf16.mxu1 %v684_v17 }
 0x13b   :  { %1100 = vmatpush1.bf16.msra.mxu1 %v683_v12  ;;  %v754_v12 = vpop.permute.xlu0 %753 }
 0x13c   :  { %1101 = vmatprep.subr.bf16.mxu1 %v686_v41 }
 0x13f   :  { %1102 = vmatpush1.bf16.msra.mxu1 %v685_v39  ;;  %v764_v26 = vpop.permute.xlu0 %763 }
 0x142   :  { %1104 = vmatmul.mubr.bf16.vlgmr.msra.gmra.mrb[32].mxu1 %v2242_v8 }
 0x143   :  { %1113 = vmatprep.mubr.bf16.mxu1 %v2245_v44  ;;  %v774_v41 = vpop.permute.xlu0 %773 }
 0x14a   :  { %1114 = vmatmul.mubr.bf16.gmra.mrb[36].mxu1 %v2247_v50 }
 0x14b   :  { %1123 = vmatprep.mubr.bf16.mxu1 %v2248_v22 }
 0x152   :  { %1124 = vmatmul.mubr.bf16.gmra.mrb[40].mxu1 %v2250_v27  ;;  %v779_v27 = vpop.permute.xlu1 %778 }
 0x153   :  { %1133 = vmatprep.mubr.bf16.mxu1 %v2251_v53 }
 0x15a   :  { %1134 = vmatmul.mubr.bf16.gmra.mrb[44].mxu1 %v2253_v59 }
 0x15b   :  { %1143 = vmatprep.mubr.bf16.mxu1 %v2254_v23 }
 0x162   :  { %1144 = vmatmul.mubr.bf16.gmra.mrb[48].mxu1 %v2256_v30 }
 0x163   :  { %1153 = vmatprep.mubr.bf16.mxu1 %v2257_v55 }
 0x16a   :  { %1154 = vmatmul.mubr.bf16.gmra.mrb[52].mxu1 %v2259_v10 }
 0x16b   :  { %1163 = vmatprep.mubr.bf16.mxu1 %v2260_v33 }
 0x172   :  { %1164 = vmatmul.mubr.bf16.gmra.mrb[56].mxu1 %v2262_v38 }
 0x173   :  { %1173 = vmatprep.mubr.bf16.mxu1 %v2263_v42 }
 0x17a   :  { %1174 = vmatmul.mubr.bf16.gmra.mrb[60].mxu1 %v2265_v43 }
 0x17b   :  { %1183 = vmatprep.mubr.bf16.mxu1 %v2266_v45  ;;  %v784_v45 = vpop.permute.xlu0 %783 }
 0x182   :  { %1184 = vmatmul.mubr.bf16.gmra.mrb[64].mxu1 %v2268_v47 }
 0x183   :  { %1193 = vmatprep.mubr.bf16.mxu1 %v2269_v48 }
 0x18a   :  { %1194 = vmatmul.mubr.bf16.gmra.mrb[68].mxu1 %v2271_v49 }
 0x18b   :  { %1203 = vmatprep.mubr.bf16.mxu1 %v2272_v51 }
 0x192   :  { %1204 = vmatmul.mubr.bf16.gmra.mrb[72].mxu1 %v2274_v3  ;;  %v789_v3 = vpop.permute.xlu1 %788 }
 0x193   :  { %1213 = vmatprep.mubr.bf16.mxu1 %v2275_v56 }
 0x19a   :  { %1214 = vmatmul.mubr.bf16.gmra.mrb[76].mxu1 %v2277_v54 }
 0x19b   :  { %1223 = vmatprep.mubr.bf16.mxu1 %v2278_v58 }
 0x1a2   :  { %1224 = vmatmul.mubr.bf16.gmra.mrb[80].mxu1 %v2280_v60 }
 0x1a3   :  { %1233 = vmatprep.mubr.bf16.mxu1 %v2281_v61 }
 0x1aa   :  { %1234 = vmatmul.mubr.bf16.gmra.mrb[84].mxu1 %v2283_v0 }
 0x1ab   :  { %1243 = vmatprep.mubr.bf16.mxu1 %v2284_v1 }
 0x1b2   :  { %1244 = vmatmul.mubr.bf16.gmra.mrb[88].mxu1 %v2286_v7 }
 0x1b3   :  { %1253 = vmatprep.mubr.bf16.mxu1 %v2287_v11 }
 0x1ba   :  { %1254 = vmatmul.mubr.bf16.gmra.mrb[92].mxu1 %v2289_v46 }
 0x215   :  { %v1105_v2 = vpop.f32.mrb[32].mxu1 }
 0x216   :  { %v1106_v13 = vadd.f32 %v1105_v2, %v754_v12  ;;  %v1107_v14 = vpop.f32.mrb[33].mxu1 }
 0x217   :  { %v1108_v16 = vadd.f32 %v1107_v14, %v754_v12  ;;  %v1109_v17 = vpop.f32.mrb[34].mxu1  ;;  %v794_v12 = vpop.permute.xlu0 %793 }
 0x218   :  { %v1110_v18 = vadd.f32 %v1109_v17, %v759_v15  ;;  %v1111_v19 = vpop.f32.mrb[35].mxu1  ;;  %v1264_v6 = vmax.f32 %v1106_v13, 0.0 }
 0x219   :  { %v1112_v63 = vadd.f32 %v1111_v19, %v759_v15  ;;  %v1265_v21 = vmax.f32 %v1108_v16, 0.0  ;;  %v799_v16 = vpop.permute.xlu1 %798 }
 0x21a   :  { %v1266_v52 = vmax.f32 %v1110_v18, 0.0 }
 0x21b   :  { %v1267_v24 = vmax.f32 %v1112_v63, 0.0 }
 0x21c   :  { %v1328_v25 = vpack.c.bf16 %v1266_v52, %v1264_v6 }
 0x21d   :  { %v1329_v28 = vpack.c.bf16 %v1267_v24, %v1265_v21  ;;  %v1115_v29 = vpop.f32.mrb[36].mxu1 }
 0x21e   :  { %v1116_v5 = vadd.f32 %v1115_v29, %v764_v26  ;;  %v1117_v31 = vpop.f32.mrb[37].mxu1 }
 0x21f   :  { %v1118_v34 = vadd.f32 %v1117_v31, %v764_v26  ;;  %v1119_v62 = vpop.f32.mrb[38].mxu1  ;;  %1744 = vmatprep.subr.bf16.mxu0 %v1329_v28  ;;  %v804_v26 = vpop.permute.xlu0 %803 }
 0x220   :  { %v1120_v35 = vadd.f32 %v1119_v62, %v769_v32  ;;  %v1121_v36 = vpop.f32.mrb[39].mxu1  ;;  %1745 = vmatpush1.bf16.msra.mxu0 %v1328_v25  ;;  %v1268_v9 = vmax.f32 %v1116_v5, 0.0 }
 0x221   :  { %v1122_v37 = vadd.f32 %v1121_v36, %v769_v32  ;;  %v1269_v57 = vmax.f32 %v1118_v34, 0.0  ;;  %v809_v32 = vpop.permute.xlu1 %808 }
 0x222   :  { %v1270_v39 = vmax.f32 %v1120_v35, 0.0 }
 0x223   :  { %v1271_v40 = vmax.f32 %v1122_v37, 0.0 }
 0x224   :  { %v1330_v4 = vpack.c.bf16 %v1270_v39, %v1268_v9 }
 0x225   :  { %v1331_v8 = vpack.c.bf16 %v1271_v40, %v1269_v57  ;;  %v1125_v44 = vpop.f32.mrb[40].mxu1 }
 0x226   :  { %v1126_v50 = vadd.f32 %v1125_v44, %v774_v41  ;;  %v1127_v22 = vpop.f32.mrb[41].mxu1 }
 0x227   :  { %v1128_v53 = vadd.f32 %v1127_v22, %v774_v41  ;;  %v1129_v59 = vpop.f32.mrb[42].mxu1  ;;  %1746 = vmatprep.subr.bf16.mxu0 %v1331_v8  ;;  %v814_v41 = vpop.permute.xlu0 %813 }
 0x228   :  { %v1130_v23 = vadd.f32 %v1129_v59, %v779_v27  ;;  %v1131_v30 = vpop.f32.mrb[43].mxu1  ;;  %1747 = vmatpush1.bf16.msra.mxu0 %v1330_v4  ;;  %v1272_v10 = vmax.f32 %v1126_v50, 0.0 }
 0x229   :  { %v1132_v55 = vadd.f32 %v1131_v30, %v779_v27  ;;  %v1273_v38 = vmax.f32 %v1128_v53, 0.0  ;;  %v819_v27 = vpop.permute.xlu1 %818 }
 0x22a   :  { %v1274_v33 = vmax.f32 %v1130_v23, 0.0 }
 0x22b   :  { %v1275_v42 = vmax.f32 %v1132_v55, 0.0 }
 0x22c   :  { %v1332_v43 = vpack.c.bf16 %v1274_v33, %v1272_v10 }
 0x22d   :  { %v1333_v47 = vpack.c.bf16 %v1275_v42, %v1273_v38  ;;  %v1135_v48 = vpop.f32.mrb[44].mxu1 }
 0x22e   :  { %v1136_v49 = vadd.f32 %v1135_v48, %v784_v45  ;;  %v1137_v51 = vpop.f32.mrb[45].mxu1 }
 0x22f   :  { %v1138_v56 = vadd.f32 %v1137_v51, %v784_v45  ;;  %v1139_v54 = vpop.f32.mrb[46].mxu1  ;;  %1748 = vmatprep.subr.bf16.mxu0 %v1333_v47  ;;  %v824_v45 = vpop.permute.xlu0 %823 }
 0x230   :  { %v1140_v58 = vadd.f32 %v1139_v54, %v789_v3  ;;  %v1141_v60 = vpop.f32.mrb[47].mxu1  ;;  %1749 = vmatpush1.bf16.msra.mxu0 %v1332_v43  ;;  %v1276_v0 = vmax.f32 %v1136_v49, 0.0 }
 0x231   :  { %v1142_v61 = vadd.f32 %v1141_v60, %v789_v3  ;;  %v1277_v7 = vmax.f32 %v1138_v56, 0.0  ;;  %v829_v3 = vpop.permute.xlu1 %828 }
 0x232   :  { %v1278_v1 = vmax.f32 %v1140_v58, 0.0 }
 0x233   :  { %v1279_v11 = vmax.f32 %v1142_v61, 0.0 }
 0x234   :  { %v1334_v46 = vpack.c.bf16 %v1278_v1, %v1276_v0 }
 0x235   :  { %v1335_v2 = vpack.c.bf16 %v1279_v11, %v1277_v7  ;;  %v1145_v13 = vpop.f32.mrb[48].mxu1 }
 0x236   :  { %v1146_v14 = vadd.f32 %v1145_v13, %v794_v12  ;;  %v1147_v15 = vpop.f32.mrb[49].mxu1 }
 0x237   :  { %v1148_v17 = vadd.f32 %v1147_v15, %v794_v12  ;;  %v1149_v18 = vpop.f32.mrb[50].mxu1  ;;  %1750 = vmatprep.subr.bf16.mxu0 %v1335_v2  ;;  %v834_v12 = vpop.permute.xlu0 %833 }
 0x238   :  { %v1150_v19 = vadd.f32 %v1149_v18, %v799_v16  ;;  %v1151_v20 = vpop.f32.mrb[51].mxu1  ;;  %1751 = vmatpush1.bf16.msra.mxu0 %v1334_v46  ;;  %v1280_v6 = vmax.f32 %v1146_v14, 0.0 }
 0x239   :  { %v1152_v63 = vadd.f32 %v1151_v20, %v799_v16  ;;  %v1281_v21 = vmax.f32 %v1148_v17, 0.0  ;;  %v839_v16 = vpop.permute.xlu1 %838 }
 0x23a   :  { %v1282_v52 = vmax.f32 %v1150_v19, 0.0 }
 0x23b   :  { %v1283_v24 = vmax.f32 %v1152_v63, 0.0 }
 0x23c   :  { %v1336_v25 = vpack.c.bf16 %v1282_v52, %v1280_v6 }
 0x23d   :  { %v1337_v28 = vpack.c.bf16 %v1283_v24, %v1281_v21  ;;  %v1155_v29 = vpop.f32.mrb[52].mxu1 }
 0x23e   :  { %v1156_v5 = vadd.f32 %v1155_v29, %v804_v26  ;;  %v1157_v31 = vpop.f32.mrb[53].mxu1 }
 0x23f   :  { %v1158_v34 = vadd.f32 %v1157_v31, %v804_v26  ;;  %v1159_v62 = vpop.f32.mrb[54].mxu1  ;;  %1752 = vmatprep.subr.bf16.mxu0 %v1337_v28  ;;  %v844_v26 = vpop.permute.xlu0 %843 }
 0x240   :  { %v1160_v35 = vadd.f32 %v1159_v62, %v809_v32  ;;  %v1161_v36 = vpop.f32.mrb[55].mxu1  ;;  %1753 = vmatpush1.bf16.msra.mxu0 %v1336_v25  ;;  %v1284_v9 = vmax.f32 %v1156_v5, 0.0 }
 0x241   :  { %v1162_v37 = vadd.f32 %v1161_v36, %v809_v32  ;;  %v1285_v57 = vmax.f32 %v1158_v34, 0.0  ;;  %v849_v32 = vpop.permute.xlu1 %848 }
 0x242   :  { %v1286_v39 = vmax.f32 %v1160_v35, 0.0 }
 0x243   :  { %v1287_v40 = vmax.f32 %v1162_v37, 0.0 }
 0x244   :  { %v1338_v4 = vpack.c.bf16 %v1286_v39, %v1284_v9 }
 0x245   :  { %v1339_v8 = vpack.c.bf16 %v1287_v40, %v1285_v57  ;;  %v1165_v44 = vpop.f32.mrb[56].mxu1 }
 0x246   :  { %v1166_v50 = vadd.f32 %v1165_v44, %v814_v41  ;;  %v1167_v22 = vpop.f32.mrb[57].mxu1 }
 0x247   :  { %v1168_v53 = vadd.f32 %v1167_v22, %v814_v41  ;;  %v1169_v59 = vpop.f32.mrb[58].mxu1  ;;  %1754 = vmatprep.subr.bf16.mxu0 %v1339_v8  ;;  %v854_v41 = vpop.permute.xlu0 %853 }
 0x248   :  { %v1170_v23 = vadd.f32 %v1169_v59, %v819_v27  ;;  %v1171_v30 = vpop.f32.mrb[59].mxu1  ;;  %1755 = vmatpush1.bf16.msra.mxu0 %v1338_v4  ;;  %v1288_v10 = vmax.f32 %v1166_v50, 0.0 }
 0x249   :  { %v1172_v55 = vadd.f32 %v1171_v30, %v819_v27  ;;  %v1289_v38 = vmax.f32 %v1168_v53, 0.0  ;;  %v859_v27 = vpop.permute.xlu1 %858 }
 0x24a   :  { %v1290_v33 = vmax.f32 %v1170_v23, 0.0 }
 0x24b   :  { %v1291_v42 = vmax.f32 %v1172_v55, 0.0 }
 0x24c   :  { %v1340_v43 = vpack.c.bf16 %v1290_v33, %v1288_v10 }
 0x24d   :  { %v1341_v47 = vpack.c.bf16 %v1291_v42, %v1289_v38  ;;  %v1175_v48 = vpop.f32.mrb[60].mxu1 }
 0x24e   :  { %v1176_v49 = vadd.f32 %v1175_v48, %v824_v45  ;;  %v1177_v51 = vpop.f32.mrb[61].mxu1 }
 0x24f   :  { %v1178_v56 = vadd.f32 %v1177_v51, %v824_v45  ;;  %v1179_v54 = vpop.f32.mrb[62].mxu1  ;;  %1756 = vmatprep.subr.bf16.mxu0 %v1341_v47  ;;  %v864_v45 = vpop.permute.xlu0 %863 }
 0x250   :  { %v1180_v58 = vadd.f32 %v1179_v54, %v829_v3  ;;  %v1181_v60 = vpop.f32.mrb[63].mxu1  ;;  %1757 = vmatpush1.bf16.msra.mxu0 %v1340_v43  ;;  %v1292_v0 = vmax.f32 %v1176_v49, 0.0 }
 0x251   :  { %v1182_v61 = vadd.f32 %v1181_v60, %v829_v3  ;;  %v1293_v7 = vmax.f32 %v1178_v56, 0.0  ;;  %v869_v3 = vpop.permute.xlu1 %868 }
 0x252   :  { %v1294_v1 = vmax.f32 %v1180_v58, 0.0 }
 0x253   :  { %v1295_v11 = vmax.f32 %v1182_v61, 0.0 }
 0x254   :  { %v1342_v46 = vpack.c.bf16 %v1294_v1, %v1292_v0 }
 0x255   :  { %v1343_v2 = vpack.c.bf16 %v1295_v11, %v1293_v7  ;;  %v1185_v13 = vpop.f32.mrb[64].mxu1 }
 0x256   :  { %v1186_v14 = vadd.f32 %v1185_v13, %v834_v12  ;;  %v1187_v15 = vpop.f32.mrb[65].mxu1 }
 0x257   :  { %v1188_v17 = vadd.f32 %v1187_v15, %v834_v12  ;;  %v1189_v18 = vpop.f32.mrb[66].mxu1  ;;  %1758 = vmatprep.subr.bf16.mxu0 %v1343_v2  ;;  %v874_v12 = vpop.permute.xlu0 %873 }
 0x258   :  { %v1190_v19 = vadd.f32 %v1189_v18, %v839_v16  ;;  %v1191_v20 = vpop.f32.mrb[67].mxu1  ;;  %1759 = vmatpush1.bf16.msra.mxu0 %v1342_v46  ;;  %v1296_v6 = vmax.f32 %v1186_v14, 0.0 }
 0x259   :  { %v1192_v63 = vadd.f32 %v1191_v20, %v839_v16  ;;  %v1297_v21 = vmax.f32 %v1188_v17, 0.0  ;;  %v879_v16 = vpop.permute.xlu1 %878 }
 0x25a   :  { %v1298_v52 = vmax.f32 %v1190_v19, 0.0 }
 0x25b   :  { %v1299_v24 = vmax.f32 %v1192_v63, 0.0 }
 0x25c   :  { %v1344_v25 = vpack.c.bf16 %v1298_v52, %v1296_v6 }
 0x25d   :  { %v1345_v28 = vpack.c.bf16 %v1299_v24, %v1297_v21  ;;  %v1195_v29 = vpop.f32.mrb[68].mxu1 }
 0x25e   :  { %v1196_v5 = vadd.f32 %v1195_v29, %v844_v26  ;;  %v1197_v31 = vpop.f32.mrb[69].mxu1 }
 0x25f   :  { %v1198_v34 = vadd.f32 %v1197_v31, %v844_v26  ;;  %v1199_v62 = vpop.f32.mrb[70].mxu1  ;;  %1760 = vmatprep.subr.bf16.mxu0 %v1345_v28  ;;  %v884_v26 = vpop.permute.xlu0 %883 }
 0x260   :  { %v1200_v35 = vadd.f32 %v1199_v62, %v849_v32  ;;  %v1201_v36 = vpop.f32.mrb[71].mxu1  ;;  %1761 = vmatpush1.bf16.msra.mxu0 %v1344_v25  ;;  %v1300_v9 = vmax.f32 %v1196_v5, 0.0 }
 0x261   :  { %v1202_v37 = vadd.f32 %v1201_v36, %v849_v32  ;;  %v1301_v57 = vmax.f32 %v1198_v34, 0.0  ;;  %v889_v32 = vpop.permute.xlu1 %888 }
 0x262   :  { %v1302_v39 = vmax.f32 %v1200_v35, 0.0 }
 0x263   :  { %v1303_v40 = vmax.f32 %v1202_v37, 0.0 }
 0x264   :  { %v1346_v4 = vpack.c.bf16 %v1302_v39, %v1300_v9 }
 0x265   :  { %v1347_v8 = vpack.c.bf16 %v1303_v40, %v1301_v57  ;;  %v1205_v44 = vpop.f32.mrb[72].mxu1 }
 0x266   :  { %v1206_v50 = vadd.f32 %v1205_v44, %v854_v41  ;;  %v1207_v22 = vpop.f32.mrb[73].mxu1 }
 0x267   :  { %v1208_v53 = vadd.f32 %v1207_v22, %v854_v41  ;;  %v1209_v59 = vpop.f32.mrb[74].mxu1  ;;  %1762 = vmatprep.subr.bf16.mxu0 %v1347_v8  ;;  %v894_v41 = vpop.permute.xlu0 %893 }
 0x268   :  { %v1210_v23 = vadd.f32 %v1209_v59, %v859_v27  ;;  %v1211_v30 = vpop.f32.mrb[75].mxu1  ;;  %1763 = vmatpush1.bf16.msra.mxu0 %v1346_v4  ;;  %v1304_v10 = vmax.f32 %v1206_v50, 0.0 }
 0x269   :  { %v1212_v55 = vadd.f32 %v1211_v30, %v859_v27  ;;  %v1305_v38 = vmax.f32 %v1208_v53, 0.0  ;;  %v899_v27 = vpop.permute.xlu1 %898 }
 0x26a   :  { %v1306_v33 = vmax.f32 %v1210_v23, 0.0 }
 0x26b   :  { %v1307_v42 = vmax.f32 %v1212_v55, 0.0 }
 0x26c   :  { %v1348_v43 = vpack.c.bf16 %v1306_v33, %v1304_v10 }
 0x26d   :  { %v1349_v47 = vpack.c.bf16 %v1307_v42, %v1305_v38  ;;  %v1215_v48 = vpop.f32.mrb[76].mxu1 }
 0x26e   :  { %v1216_v49 = vadd.f32 %v1215_v48, %v864_v45  ;;  %v1217_v51 = vpop.f32.mrb[77].mxu1 }
 0x26f   :  { %v1218_v56 = vadd.f32 %v1217_v51, %v864_v45  ;;  %v1219_v54 = vpop.f32.mrb[78].mxu1  ;;  %1764 = vmatprep.subr.bf16.mxu0 %v1349_v47  ;;  %v904_v45 = vpop.permute.xlu0 %903 }
 0x270   :  { %v1220_v58 = vadd.f32 %v1219_v54, %v869_v3  ;;  %v1221_v60 = vpop.f32.mrb[79].mxu1  ;;  %1765 = vmatpush1.bf16.msra.mxu0 %v1348_v43  ;;  %v1308_v0 = vmax.f32 %v1216_v49, 0.0 }
 0x271   :  { %v1222_v61 = vadd.f32 %v1221_v60, %v869_v3  ;;  %v1309_v7 = vmax.f32 %v1218_v56, 0.0  ;;  %v909_v3 = vpop.permute.xlu1 %908 }
 0x272   :  { %v1310_v1 = vmax.f32 %v1220_v58, 0.0 }
 0x273   :  { %v1311_v11 = vmax.f32 %v1222_v61, 0.0 }
 0x274   :  { %v1350_v46 = vpack.c.bf16 %v1310_v1, %v1308_v0 }
 0x275   :  { %v1351_v2 = vpack.c.bf16 %v1311_v11, %v1309_v7  ;;  %v1225_v13 = vpop.f32.mrb[80].mxu1 }
 0x276   :  { %v1226_v14 = vadd.f32 %v1225_v13, %v874_v12  ;;  %v1227_v15 = vpop.f32.mrb[81].mxu1  ;;  %v2293_v13 = vld [vmem:[%s3105_s5 + $0x14] ss:$8 sps:$4 sm:$0xff]  }
 0x277   :  { %v1228_v17 = vadd.f32 %v1227_v15, %v874_v12  ;;  %v1229_v18 = vpop.f32.mrb[82].mxu1  ;;  %1766 = vmatprep.subr.bf16.mxu0 %v1351_v2  ;;  %v2290_v2 = vld [vmem:[%s3105_s5] ss:$8 sps:$4 sm:$0xff]   ;;  %v2296_v15 = vld [vmem:[%s3105_s5 + $0x24] ss:$8 sps:$4 sm:$0xff]  }
 0x278   :  { %v1230_v19 = vadd.f32 %v1229_v18, %v879_v16  ;;  %v1231_v20 = vpop.f32.mrb[83].mxu1  ;;  %1767 = vmatpush1.bf16.msra.mxu0 %v1350_v46  ;;  %v1312_v6 = vmax.f32 %v1226_v14, 0.0  ;;  %v2295_v14 = vld [vmem:[%s3105_s5 + $0x10] ss:$8 sps:$4 sm:$0xff]  }
 0x279   :  { %v1232_v63 = vadd.f32 %v1231_v20, %v879_v16  ;;  %v1313_v21 = vmax.f32 %v1228_v17, 0.0  ;;  %v2298_v16 = vld [vmem:[%s3105_s5 + $0x20] ss:$8 sps:$4 sm:$0xff]   ;;  %v2299_v17 = vld [vmem:[%s3105_s5 + $0x34] ss:$8 sps:$4 sm:$0xff]  }
 0x27a   :  { %v1314_v52 = vmax.f32 %v1230_v19, 0.0  ;;  %v2301_v18 = vld [vmem:[%s3105_s5 + $0x30] ss:$8 sps:$4 sm:$0xff]   ;;  %v2302_v19 = vld [vmem:[%s3105_s5 + $0x44] ss:$8 sps:$4 sm:$0xff]  }
 0x27b   :  { %v1315_v24 = vmax.f32 %v1232_v63, 0.0  ;;  %v2304_v20 = vld [vmem:[%s3105_s5 + $0x40] ss:$8 sps:$4 sm:$0xff]   ;;  %v2305_v63 = vld [vmem:[%s3105_s5 + $0x54] ss:$8 sps:$4 sm:$0xff]  }
 0x27c   :  { %v1352_v25 = vpack.c.bf16 %v1314_v52, %v1312_v6  ;;  %v2307_v6 = vld [vmem:[%s3105_s5 + $0x50] ss:$8 sps:$4 sm:$0xff]   ;;  %v2308_v52 = vld [vmem:[%s3105_s5 + $0x64] ss:$8 sps:$4 sm:$0xff]  }
 0x27d   :  { %v1353_v28 = vpack.c.bf16 %v1315_v24, %v1313_v21  ;;  %v1235_v29 = vpop.f32.mrb[84].mxu1  ;;  %v2310_v21 = vld [vmem:[%s3105_s5 + $0x60] ss:$8 sps:$4 sm:$0xff]   ;;  %v2311_v24 = vld [vmem:[%s3105_s5 + $0x74] ss:$8 sps:$4 sm:$0xff]  }
 0x27e   :  { %v1236_v5 = vadd.f32 %v1235_v29, %v884_v26  ;;  %v1237_v31 = vpop.f32.mrb[85].mxu1  ;;  %v2317_v29 = vld [vmem:[%s3105_s5 + $0x94] ss:$8 sps:$4 sm:$0xff]  }
 0x27f   :  { %v1238_v34 = vadd.f32 %v1237_v31, %v884_v26  ;;  %v1239_v62 = vpop.f32.mrb[86].mxu1  ;;  %1768 = vmatprep.subr.bf16.mxu0 %v1353_v28  ;;  %v2314_v26 = vld [vmem:[%s3105_s5 + $0x84] ss:$8 sps:$4 sm:$0xff]   ;;  %v2316_v28 = vld [vmem:[%s3105_s5 + $0x80] ss:$8 sps:$4 sm:$0xff]  }
 0x280   :  { %v1240_v35 = vadd.f32 %v1239_v62, %v889_v32  ;;  %v1241_v36 = vpop.f32.mrb[87].mxu1  ;;  %1769 = vmatpush1.bf16.msra.mxu0 %v1352_v25  ;;  %v1316_v9 = vmax.f32 %v1236_v5, 0.0  ;;  %v2313_v25 = vld [vmem:[%s3105_s5 + $0x70] ss:$8 sps:$4 sm:$0xff]   ;;  %v2320_v31 = vld [vmem:[%s3105_s5 + $0xa4] ss:$8 sps:$4 sm:$0xff]  }
 0x281   :  { %v1242_v37 = vadd.f32 %v1241_v36, %v889_v32  ;;  %v1317_v57 = vmax.f32 %v1238_v34, 0.0  ;;  %v2319_v5 = vld [vmem:[%s3105_s5 + $0x90] ss:$8 sps:$4 sm:$0xff]   ;;  %v2322_v32 = vld [vmem:[%s3105_s5 + $0xa0] ss:$8 sps:$4 sm:$0xff]  }
 0x282   :  { %v1318_v39 = vmax.f32 %v1240_v35, 0.0  ;;  %v2323_v34 = vld [vmem:[%s3105_s5 + $0xb4] ss:$8 sps:$4 sm:$0xff]   ;;  %v2325_v62 = vld [vmem:[%s3105_s5 + $0xb0] ss:$8 sps:$4 sm:$0xff]  }
 0x283   :  { %v1319_v40 = vmax.f32 %v1242_v37, 0.0  ;;  %v2326_v35 = vld [vmem:[%s3105_s5 + $0xc4] ss:$8 sps:$4 sm:$0xff]   ;;  %v2328_v36 = vld [vmem:[%s3105_s5 + $0xc0] ss:$8 sps:$4 sm:$0xff]  }
 0x284   :  { %v1354_v4 = vpack.c.bf16 %v1318_v39, %v1316_v9  ;;  %v2329_v37 = vld [vmem:[%s3105_s5 + $0xd4] ss:$8 sps:$4 sm:$0xff]   ;;  %v2331_v9 = vld [vmem:[%s3105_s5 + $0xd0] ss:$8 sps:$4 sm:$0xff]   ;;  %v2332_v39 = vld [vmem:[%s3105_s5 + $0xe4] ss:$8 sps:$4 sm:$0xff]  }
 0x285   :  { %v1355_v8 = vpack.c.bf16 %v1319_v40, %v1317_v57  ;;  %v1245_v44 = vpop.f32.mrb[88].mxu1  ;;  %v2334_v57 = vld [vmem:[%s3105_s5 + $0xe0] ss:$8 sps:$4 sm:$0xff]   ;;  %v2335_v40 = vld [vmem:[%s3105_s5 + $0xf4] ss:$8 sps:$4 sm:$0xff]  }
 0x286   :  { %v1246_v50 = vadd.f32 %v1245_v44, %v894_v41  ;;  %v1247_v22 = vpop.f32.mrb[89].mxu1 }
 0x287   :  { %v1248_v53 = vadd.f32 %v1247_v22, %v894_v41  ;;  %v1249_v59 = vpop.f32.mrb[90].mxu1  ;;  %1770 = vmatprep.subr.bf16.mxu0 %v1355_v8  ;;  %v1427_v41 = vpop.permute.xlu0 %1426 }
 0x288   :  { %v1250_v23 = vadd.f32 %v1249_v59, %v899_v27  ;;  %v1251_v30 = vpop.f32.mrb[91].mxu1  ;;  %1771 = vmatpush1.bf16.msra.mxu0 %v1354_v4  ;;  %v1320_v10 = vmax.f32 %v1246_v50, 0.0  ;;  %v2337_v4 = vld [vmem:[%s3105_s5 + $0xf0] ss:$8 sps:$4 sm:$0xff]   ;;  %v1432_v22 = vpop.permute.xlu1 %1431  ;;  %s2363_s5 = smov [#allocation2]  }
 0x289   :  { %v1252_v55 = vadd.f32 %v1251_v30, %v899_v27  ;;  %v1321_v38 = vmax.f32 %v1248_v53, 0.0  ;;  %v3083_v59 = vld.sshfl [vmem:[%s3107_s7] sm:$0x33 pattern:$0x76325410]  ;;  %s2114_s7 = sshll.u32 %s2363_s5, 4  ;;  %s2115_s7 = int_to_ptr.vmem [resolvable:$true] %s2114_s7 }
 0x28a   :  { %v1322_v33 = vmax.f32 %v1250_v23, 0.0  ;;  %s2338_s4 = scalar_lea.vmem %s2115_s7, 256  ;;  %p2343_p1 = scmp.lt.s32.totalorder %s2115_s7, %s2115_s7 }
 0x28b   :  { %v1323_v42 = vmax.f32 %v1252_v55, 0.0  ;;  %v2048_v55 = vcombine.high %v3083_v59, %v3083_v59  ;;  %p2339_p0 = scmp.ne.s32.totalorder %s2115_s7, %s2338_s4  ;;  %p2344_p2 = scmp.lt.s32.totalorder %s2338_s4, %s2338_s4 }
 0x28c   :  { %v1356_v43 = vpack.c.bf16 %v1322_v33, %v1320_v10 }
 0x28d   :  { %v1357_v47 = vpack.c.bf16 %v1323_v42, %v1321_v38  ;;  %v1255_v48 = vpop.f32.mrb[92].mxu1  ;;  %2083 = vmatprep.mubr.bf16.mxu1 %v2048_v55  ;;  %p2345_p3 = por %p2344_p2, %p2343_p1 }
 0x28e   :  { %v1256_v49 = vadd.f32 %v1255_v48, %v904_v45  ;;  %v1257_v51 = vpop.f32.mrb[93].mxu1 }
 0x28f   :  { %v1258_v56 = vadd.f32 %v1257_v51, %v904_v45  ;;  %v1259_v54 = vpop.f32.mrb[94].mxu1  ;;  %1772 = vmatprep.subr.bf16.mxu0 %v1357_v47  ;;  %v1437_v47 = vpop.permute.xlu0 %1436  ;;  %p2346_p4 = pnand %p2345_p3, %p2339_p0 }
 0x290   :  { %v1260_v58 = vadd.f32 %v1259_v54, %v909_v3  ;;  %v1261_v60 = vpop.f32.mrb[95].mxu1  ;;  %1773 = vmatpush1.bf16.msra.mxu0 %v1356_v43  ;;  %v1324_v0 = vmax.f32 %v1256_v49, 0.0 }
 0x291   :  { %v1262_v61 = vadd.f32 %v1261_v60, %v909_v3  ;;  %v1325_v7 = vmax.f32 %v1258_v56, 0.0  ;;  %v1442_v56 = vpop.permute.xlu1 %1441 }
 0x292   :  { %v1326_v1 = vmax.f32 %v1260_v58, 0.0 }
 0x293   :  { %v1327_v11 = vmax.f32 %v1262_v61, 0.0 }
 0x294   :  { %v1358_v46 = vpack.c.bf16 %v1326_v1, %v1324_v0 }
 0x295   :  { %v1359_v12 = vpack.c.bf16 %v1327_v11, %v1325_v7 }
 0x297   :  { %1774 = vmatprep.subr.bf16.mxu0 %v1359_v12 }
 0x298   :  { %1775 = vmatpush1.bf16.msra.mxu0 %v1358_v46 }
 0x29b   :  { %1777 = vmatmul.mubr.bf16.vlgmr.msra.gmra.mrb[32].mxu0 %v2290_v2  ;;  %v1447_v2 = vpop.permute.xlu0 %1446 }
 0x29c   :  { %1786 = vmatprep.mubr.bf16.mxu0 %v2293_v13 }
 0x2a3   :  { %1787 = vmatmul.mubr.bf16.gmra.mrb[36].mxu0 %v2295_v14 }
 0x2a4   :  { %1796 = vmatprep.mubr.bf16.mxu0 %v2296_v15 }
 0x2ab   :  { %1797 = vmatmul.mubr.bf16.gmra.mrb[40].mxu0 %v2298_v16 }
 0x2ac   :  { %1806 = vmatprep.mubr.bf16.mxu0 %v2299_v17  ;;  %v1452_v17 = vpop.permute.xlu1 %1451 }
 0x2b3   :  { %1807 = vmatmul.mubr.bf16.gmra.mrb[44].mxu0 %v2301_v18 }
 0x2b4   :  { %1816 = vmatprep.mubr.bf16.mxu0 %v2302_v19 }
 0x2bb   :  { %1817 = vmatmul.mubr.bf16.gmra.mrb[48].mxu0 %v2304_v20 }
 0x2bc   :  { %1826 = vmatprep.mubr.bf16.mxu0 %v2305_v63 }
 0x2c3   :  { %1827 = vmatmul.mubr.bf16.gmra.mrb[52].mxu0 %v2307_v6 }
 0x2c4   :  { %1836 = vmatprep.mubr.bf16.mxu0 %v2308_v52 }
 0x2cb   :  { %1837 = vmatmul.mubr.bf16.gmra.mrb[56].mxu0 %v2310_v21 }
 0x2cc   :  { %1846 = vmatprep.mubr.bf16.mxu0 %v2311_v24 }
 0x2d3   :  { %1847 = vmatmul.mubr.bf16.gmra.mrb[60].mxu0 %v2313_v25 }
 0x2d4   :  { %1856 = vmatprep.mubr.bf16.mxu0 %v2314_v26 }
 0x2db   :  { %1857 = vmatmul.mubr.bf16.gmra.mrb[64].mxu0 %v2316_v28  ;;  %v1457_v28 = vpop.permute.xlu0 %1456 }
 0x2dc   :  { %1866 = vmatprep.mubr.bf16.mxu0 %v2317_v29 }
 0x2e3   :  { %1867 = vmatmul.mubr.bf16.gmra.mrb[68].mxu0 %v2319_v5 }
 0x2e4   :  { %1876 = vmatprep.mubr.bf16.mxu0 %v2320_v31 }
 0x2eb   :  { %1877 = vmatmul.mubr.bf16.gmra.mrb[72].mxu0 %v2322_v32 }
 0x2ec   :  { %1886 = vmatprep.mubr.bf16.mxu0 %v2323_v34  ;;  %v1462_v34 = vpop.permute.xlu1 %1461 }
 0x2f3   :  { %1887 = vmatmul.mubr.bf16.gmra.mrb[76].mxu0 %v2325_v62 }
 0x2f4   :  { %1896 = vmatprep.mubr.bf16.mxu0 %v2326_v35 }
 0x2fb   :  { %1897 = vmatmul.mubr.bf16.gmra.mrb[80].mxu0 %v2328_v36 }
 0x2fc   :  { %1906 = vmatprep.mubr.bf16.mxu0 %v2329_v37 }
 0x303   :  { %1907 = vmatmul.mubr.bf16.gmra.mrb[84].mxu0 %v2331_v9 }
 0x304   :  { %1916 = vmatprep.mubr.bf16.mxu0 %v2332_v39 }
 0x30b   :  { %1917 = vmatmul.mubr.bf16.gmra.mrb[88].mxu0 %v2334_v57 }
 0x30c   :  { %1926 = vmatprep.mubr.bf16.mxu0 %v2335_v40 }
 0x313   :  { %1927 = vmatmul.mubr.bf16.gmra.mrb[92].mxu0 %v2337_v4 }
 0x36e   :  { %v1778_v8 = vpop.f32.mrb[32].mxu0 }
 0x36f   :  { %v1779_v44 = vadd.f32 %v1778_v8, %v1427_v41  ;;  %v1780_v50 = vpop.f32.mrb[33].mxu0  ;;  %v1467_v8 = vpop.permute.xlu0 %1466 }
 0x370   :  { %v1781_v27 = vadd.f32 %v1780_v50, %v1427_v41  ;;  %v1782_v53 = vpop.f32.mrb[34].mxu0 }
 0x371   :  { %v1783_v23 = vadd.f32 %v1782_v53, %v1432_v22  ;;  %v1784_v30 = vpop.f32.mrb[35].mxu0  ;;  %v1937_v33 = vmax.f32 %v1779_v44, 0.0  ;;  %v1472_v53 = vpop.permute.xlu1 %1471 }
 0x372   :  { %v1785_v10 = vadd.f32 %v1784_v30, %v1432_v22  ;;  %v1938_v42 = vmax.f32 %v1781_v27, 0.0 }
 0x373   :  { %v1939_v38 = vmax.f32 %v1783_v23, 0.0 }
 0x374   :  { %v1940_v43 = vmax.f32 %v1785_v10, 0.0 }
 0x375   :  { %v2001_v45 = vpack.c.bf16 %v1939_v38, %v1937_v33 }
 0x376   :  { %v2002_v48 = vpack.c.bf16 %v1940_v43, %v1938_v42  ;;  %v1788_v49 = vpop.f32.mrb[36].mxu0 }
 0x377   :  { %v1789_v51 = vadd.f32 %v1788_v49, %v1437_v47  ;;  %v1790_v3 = vpop.f32.mrb[37].mxu0 }
 0x378   :  { %v1791_v54 = vadd.f32 %v1790_v3, %v1437_v47  ;;  %v1792_v58 = vpop.f32.mrb[38].mxu0  ;;  %2051 = vmatprep.subr.bf16.mxu1 %v2002_v48  ;;  %v1477_v48 = vpop.permute.xlu0 %1476 }
 0x379   :  { %v1793_v60 = vadd.f32 %v1792_v58, %v1442_v56  ;;  %v1794_v61 = vpop.f32.mrb[39].mxu0  ;;  %2052 = vmatpush1.bf16.msra.mxu1 %v2001_v45  ;;  %v1941_v1 = vmax.f32 %v1789_v51, 0.0 }
 0x37a   :  { %v1795_v0 = vadd.f32 %v1794_v61, %v1442_v56  ;;  %v1942_v11 = vmax.f32 %v1791_v54, 0.0  ;;  %v1482_v54 = vpop.permute.xlu1 %1481 }
 0x37b   :  { %v1943_v7 = vmax.f32 %v1793_v60, 0.0 }
 0x37c   :  { %v1944_v46 = vmax.f32 %v1795_v0, 0.0 }
 0x37d   :  { %v2003_v12 = vpack.c.bf16 %v1943_v7, %v1941_v1 }
 0x37e   :  { %v2004_v13 = vpack.c.bf16 %v1944_v46, %v1942_v11  ;;  %v1798_v14 = vpop.f32.mrb[40].mxu0 }
 0x37f   :  { %v1799_v15 = vadd.f32 %v1798_v14, %v1447_v2  ;;  %v1800_v16 = vpop.f32.mrb[41].mxu0 }
 0x380   :  { %v1801_v18 = vadd.f32 %v1800_v16, %v1447_v2  ;;  %v1802_v19 = vpop.f32.mrb[42].mxu0  ;;  %2053 = vmatprep.subr.bf16.mxu1 %v2004_v13  ;;  %v1487_v13 = vpop.permute.xlu0 %1486 }
 0x381   :  { %v1803_v20 = vadd.f32 %v1802_v19, %v1452_v17  ;;  %v1804_v63 = vpop.f32.mrb[43].mxu0  ;;  %2054 = vmatpush1.bf16.msra.mxu1 %v2003_v12  ;;  %v1945_v52 = vmax.f32 %v1799_v15, 0.0 }
 0x382   :  { %v1805_v6 = vadd.f32 %v1804_v63, %v1452_v17  ;;  %v1946_v24 = vmax.f32 %v1801_v18, 0.0  ;;  %v1492_v18 = vpop.permute.xlu1 %1491 }
 0x383   :  { %v1947_v21 = vmax.f32 %v1803_v20, 0.0 }
 0x384   :  { %v1948_v25 = vmax.f32 %v1805_v6, 0.0 }
 0x385   :  { %v2005_v26 = vpack.c.bf16 %v1947_v21, %v1945_v52 }
 0x386   :  { %v2006_v29 = vpack.c.bf16 %v1948_v25, %v1946_v24  ;;  %v1808_v5 = vpop.f32.mrb[44].mxu0 }
 0x387   :  { %v1809_v31 = vadd.f32 %v1808_v5, %v1457_v28  ;;  %v1810_v32 = vpop.f32.mrb[45].mxu0 }
 0x388   :  { %v1811_v62 = vadd.f32 %v1810_v32, %v1457_v28  ;;  %v1812_v35 = vpop.f32.mrb[46].mxu0  ;;  %2055 = vmatprep.subr.bf16.mxu1 %v2006_v29  ;;  %v1497_v29 = vpop.permute.xlu0 %1496 }
 0x389   :  { %v1813_v36 = vadd.f32 %v1812_v35, %v1462_v34  ;;  %v1814_v37 = vpop.f32.mrb[47].mxu0  ;;  %2056 = vmatpush1.bf16.msra.mxu1 %v2005_v26  ;;  %v1949_v39 = vmax.f32 %v1809_v31, 0.0 }
 0x38a   :  { %v1815_v9 = vadd.f32 %v1814_v37, %v1462_v34  ;;  %v1950_v40 = vmax.f32 %v1811_v62, 0.0  ;;  %v1502_v62 = vpop.permute.xlu1 %1501 }
 0x38b   :  { %v1951_v57 = vmax.f32 %v1813_v36, 0.0 }
 0x38c   :  { %v1952_v4 = vmax.f32 %v1815_v9, 0.0 }
 0x38d   :  { %v2007_v41 = vpack.c.bf16 %v1951_v57, %v1949_v39 }
 0x38e   :  { %v2008_v44 = vpack.c.bf16 %v1952_v4, %v1950_v40  ;;  %v1818_v50 = vpop.f32.mrb[48].mxu0 }
 0x38f   :  { %v1819_v22 = vadd.f32 %v1818_v50, %v1467_v8  ;;  %v1820_v27 = vpop.f32.mrb[49].mxu0 }
 0x390   :  { %v1821_v23 = vadd.f32 %v1820_v27, %v1467_v8  ;;  %v1822_v30 = vpop.f32.mrb[50].mxu0  ;;  %2057 = vmatprep.subr.bf16.mxu1 %v2008_v44  ;;  %v1507_v44 = vpop.permute.xlu0 %1506 }
 0x391   :  { %v1823_v55 = vadd.f32 %v1822_v30, %v1472_v53  ;;  %v1824_v10 = vpop.f32.mrb[51].mxu0  ;;  %2058 = vmatpush1.bf16.msra.mxu1 %v2007_v41  ;;  %v1953_v38 = vmax.f32 %v1819_v22, 0.0 }
 0x392   :  { %v1825_v33 = vadd.f32 %v1824_v10, %v1472_v53  ;;  %v1954_v43 = vmax.f32 %v1821_v23, 0.0  ;;  %v1512_v23 = vpop.permute.xlu1 %1511 }
 0x393   :  { %v1955_v42 = vmax.f32 %v1823_v55, 0.0 }
 0x394   :  { %v1956_v45 = vmax.f32 %v1825_v33, 0.0 }
 0x395   :  { %v2009_v47 = vpack.c.bf16 %v1955_v42, %v1953_v38 }
 0x396   :  { %v2010_v49 = vpack.c.bf16 %v1956_v45, %v1954_v43  ;;  %v1828_v51 = vpop.f32.mrb[52].mxu0 }
 0x397   :  { %v1829_v3 = vadd.f32 %v1828_v51, %v1477_v48  ;;  %v1830_v56 = vpop.f32.mrb[53].mxu0 }
 0x398   :  { %v1831_v58 = vadd.f32 %v1830_v56, %v1477_v48  ;;  %v1832_v60 = vpop.f32.mrb[54].mxu0  ;;  %2059 = vmatprep.subr.bf16.mxu1 %v2010_v49  ;;  %v1517_v49 = vpop.permute.xlu0 %1516 }
 0x399   :  { %v1833_v61 = vadd.f32 %v1832_v60, %v1482_v54  ;;  %v1834_v0 = vpop.f32.mrb[55].mxu0  ;;  %2060 = vmatpush1.bf16.msra.mxu1 %v2009_v47  ;;  %v1957_v7 = vmax.f32 %v1829_v3, 0.0 }
 0x39a   :  { %v1835_v1 = vadd.f32 %v1834_v0, %v1482_v54  ;;  %v1958_v46 = vmax.f32 %v1831_v58, 0.0  ;;  %v1522_v58 = vpop.permute.xlu1 %1521 }
 0x39b   :  { %v1959_v11 = vmax.f32 %v1833_v61, 0.0 }
 0x39c   :  { %v1960_v12 = vmax.f32 %v1835_v1, 0.0 }
 0x39d   :  { %v2011_v2 = vpack.c.bf16 %v1959_v11, %v1957_v7 }
 0x39e   :  { %v2012_v14 = vpack.c.bf16 %v1960_v12, %v1958_v46  ;;  %v1838_v15 = vpop.f32.mrb[56].mxu0 }
 0x39f   :  { %v1839_v16 = vadd.f32 %v1838_v15, %v1487_v13  ;;  %v1840_v17 = vpop.f32.mrb[57].mxu0 }
 0x3a0   :  { %v1841_v19 = vadd.f32 %v1840_v17, %v1487_v13  ;;  %v1842_v20 = vpop.f32.mrb[58].mxu0  ;;  %2061 = vmatprep.subr.bf16.mxu1 %v2012_v14  ;;  %v1527_v14 = vpop.permute.xlu0 %1526 }
 0x3a1   :  { %v1843_v63 = vadd.f32 %v1842_v20, %v1492_v18  ;;  %v1844_v6 = vpop.f32.mrb[59].mxu0  ;;  %2062 = vmatpush1.bf16.msra.mxu1 %v2011_v2  ;;  %v1961_v21 = vmax.f32 %v1839_v16, 0.0 }
 0x3a2   :  { %v1845_v52 = vadd.f32 %v1844_v6, %v1492_v18  ;;  %v1962_v25 = vmax.f32 %v1841_v19, 0.0  ;;  %v1532_v19 = vpop.permute.xlu1 %1531 }
 0x3a3   :  { %v1963_v24 = vmax.f32 %v1843_v63, 0.0 }
 0x3a4   :  { %v1964_v26 = vmax.f32 %v1845_v52, 0.0 }
 0x3a5   :  { %v2013_v28 = vpack.c.bf16 %v1963_v24, %v1961_v21 }
 0x3a6   :  { %v2014_v5 = vpack.c.bf16 %v1964_v26, %v1962_v25  ;;  %v1848_v31 = vpop.f32.mrb[60].mxu0 }
 0x3a7   :  { %v1849_v32 = vadd.f32 %v1848_v31, %v1497_v29  ;;  %v1850_v34 = vpop.f32.mrb[61].mxu0 }
 0x3a8   :  { %v1851_v35 = vadd.f32 %v1850_v34, %v1497_v29  ;;  %v1852_v36 = vpop.f32.mrb[62].mxu0  ;;  %2063 = vmatprep.subr.bf16.mxu1 %v2014_v5  ;;  %v1537_v5 = vpop.permute.xlu0 %1536 }
 0x3a9   :  { %v1853_v37 = vadd.f32 %v1852_v36, %v1502_v62  ;;  %v1854_v9 = vpop.f32.mrb[63].mxu0  ;;  %2064 = vmatpush1.bf16.msra.mxu1 %v2013_v28  ;;  %v1965_v57 = vmax.f32 %v1849_v32, 0.0 }
 0x3aa   :  { %v1855_v39 = vadd.f32 %v1854_v9, %v1502_v62  ;;  %v1966_v4 = vmax.f32 %v1851_v35, 0.0  ;;  %v1542_v35 = vpop.permute.xlu1 %1541 }
 0x3ab   :  { %v1967_v40 = vmax.f32 %v1853_v37, 0.0 }
 0x3ac   :  { %v1968_v41 = vmax.f32 %v1855_v39, 0.0 }
 0x3ad   :  { %v2015_v8 = vpack.c.bf16 %v1967_v40, %v1965_v57 }
 0x3ae   :  { %v2016_v50 = vpack.c.bf16 %v1968_v41, %v1966_v4  ;;  %v1858_v22 = vpop.f32.mrb[64].mxu0 }
 0x3af   :  { %v1859_v27 = vadd.f32 %v1858_v22, %v1507_v44  ;;  %v1860_v53 = vpop.f32.mrb[65].mxu0 }
 0x3b0   :  { %v1861_v30 = vadd.f32 %v1860_v53, %v1507_v44  ;;  %v1862_v55 = vpop.f32.mrb[66].mxu0  ;;  %2065 = vmatprep.subr.bf16.mxu1 %v2016_v50  ;;  %v1547_v50 = vpop.permute.xlu0 %1546 }
 0x3b1   :  { %v1863_v10 = vadd.f32 %v1862_v55, %v1512_v23  ;;  %v1864_v33 = vpop.f32.mrb[67].mxu0  ;;  %2066 = vmatpush1.bf16.msra.mxu1 %v2015_v8  ;;  %v1969_v42 = vmax.f32 %v1859_v27, 0.0 }
 0x3b2   :  { %v1865_v38 = vadd.f32 %v1864_v33, %v1512_v23  ;;  %v1970_v45 = vmax.f32 %v1861_v30, 0.0  ;;  %v1552_v30 = vpop.permute.xlu1 %1551 }
 0x3b3   :  { %v1971_v43 = vmax.f32 %v1863_v10, 0.0 }
 0x3b4   :  { %v1972_v47 = vmax.f32 %v1865_v38, 0.0 }
 0x3b5   :  { %v2017_v48 = vpack.c.bf16 %v1971_v43, %v1969_v42 }
 0x3b6   :  { %v2018_v51 = vpack.c.bf16 %v1972_v47, %v1970_v45  ;;  %v1868_v3 = vpop.f32.mrb[68].mxu0 }
 0x3b7   :  { %v1869_v56 = vadd.f32 %v1868_v3, %v1517_v49  ;;  %v1870_v54 = vpop.f32.mrb[69].mxu0 }
 0x3b8   :  { %v1871_v60 = vadd.f32 %v1870_v54, %v1517_v49  ;;  %v1872_v61 = vpop.f32.mrb[70].mxu0  ;;  %2067 = vmatprep.subr.bf16.mxu1 %v2018_v51  ;;  %v1557_v51 = vpop.permute.xlu0 %1556 }
 0x3b9   :  { %v1873_v0 = vadd.f32 %v1872_v61, %v1522_v58  ;;  %v1874_v1 = vpop.f32.mrb[71].mxu0  ;;  %2068 = vmatpush1.bf16.msra.mxu1 %v2017_v48  ;;  %v1973_v11 = vmax.f32 %v1869_v56, 0.0 }
 0x3ba   :  { %v1875_v7 = vadd.f32 %v1874_v1, %v1522_v58  ;;  %v1974_v12 = vmax.f32 %v1871_v60, 0.0  ;;  %v1562_v60 = vpop.permute.xlu1 %1561 }
 0x3bb   :  { %v1975_v46 = vmax.f32 %v1873_v0, 0.0 }
 0x3bc   :  { %v1976_v2 = vmax.f32 %v1875_v7, 0.0 }
 0x3bd   :  { %v2019_v13 = vpack.c.bf16 %v1975_v46, %v1973_v11 }
 0x3be   :  { %v2020_v15 = vpack.c.bf16 %v1976_v2, %v1974_v12  ;;  %v1878_v16 = vpop.f32.mrb[72].mxu0 }
 0x3bf   :  { %v1879_v17 = vadd.f32 %v1878_v16, %v1527_v14  ;;  %v1880_v18 = vpop.f32.mrb[73].mxu0 }
 0x3c0   :  { %v1881_v20 = vadd.f32 %v1880_v18, %v1527_v14  ;;  %v1882_v63 = vpop.f32.mrb[74].mxu0  ;;  %2069 = vmatprep.subr.bf16.mxu1 %v2020_v15  ;;  %v1567_v15 = vpop.permute.xlu0 %1566 }
 0x3c1   :  { %v1883_v6 = vadd.f32 %v1882_v63, %v1532_v19  ;;  %v1884_v52 = vpop.f32.mrb[75].mxu0  ;;  %2070 = vmatpush1.bf16.msra.mxu1 %v2019_v13  ;;  %v1977_v24 = vmax.f32 %v1879_v17, 0.0 }
 0x3c2   :  { %v1885_v21 = vadd.f32 %v1884_v52, %v1532_v19  ;;  %v1978_v26 = vmax.f32 %v1881_v20, 0.0  ;;  %v1572_v20 = vpop.permute.xlu1 %1571 }
 0x3c3   :  { %v1979_v25 = vmax.f32 %v1883_v6, 0.0 }
 0x3c4   :  { %v1980_v28 = vmax.f32 %v1885_v21, 0.0 }
 0x3c5   :  { %v2021_v29 = vpack.c.bf16 %v1979_v25, %v1977_v24 }
 0x3c6   :  { %v2022_v31 = vpack.c.bf16 %v1980_v28, %v1978_v26  ;;  %v1888_v32 = vpop.f32.mrb[76].mxu0 }
 0x3c7   :  { %v1889_v34 = vadd.f32 %v1888_v32, %v1537_v5  ;;  %v1890_v62 = vpop.f32.mrb[77].mxu0 }
 0x3c8   :  { %v1891_v36 = vadd.f32 %v1890_v62, %v1537_v5  ;;  %v1892_v37 = vpop.f32.mrb[78].mxu0  ;;  %2071 = vmatprep.subr.bf16.mxu1 %v2022_v31  ;;  %v1577_v31 = vpop.permute.xlu0 %1576 }
 0x3c9   :  { %v1893_v9 = vadd.f32 %v1892_v37, %v1542_v35  ;;  %v1894_v39 = vpop.f32.mrb[79].mxu0  ;;  %2072 = vmatpush1.bf16.msra.mxu1 %v2021_v29  ;;  %v1981_v40 = vmax.f32 %v1889_v34, 0.0 }
 0x3ca   :  { %v1895_v57 = vadd.f32 %v1894_v39, %v1542_v35  ;;  %v1982_v41 = vmax.f32 %v1891_v36, 0.0  ;;  %v1582_v36 = vpop.permute.xlu1 %1581 }
 0x3cb   :  { %v1983_v4 = vmax.f32 %v1893_v9, 0.0 }
 0x3cc   :  { %v1984_v8 = vmax.f32 %v1895_v57, 0.0 }
 0x3cd   :  { %v2023_v44 = vpack.c.bf16 %v1983_v4, %v1981_v40 }
 0x3ce   :  { %v2024_v22 = vpack.c.bf16 %v1984_v8, %v1982_v41  ;;  %v1898_v27 = vpop.f32.mrb[80].mxu0 }
 0x3cf   :  { %v1899_v53 = vadd.f32 %v1898_v27, %v1547_v50  ;;  %v1900_v23 = vpop.f32.mrb[81].mxu0  ;;  %v2038_v27 = vpop.permute.xlu0 %2037 }
 0x3d0   :  { %v1901_v55 = vadd.f32 %v1900_v23, %v1547_v50  ;;  %v1902_v10 = vpop.f32.mrb[82].mxu0  ;;  %2073 = vmatprep.subr.bf16.mxu1 %v2024_v22 }
 0x3d1   :  { %v1903_v33 = vadd.f32 %v1902_v10, %v1552_v30  ;;  %v1904_v38 = vpop.f32.mrb[83].mxu0  ;;  %2074 = vmatpush1.bf16.msra.mxu1 %v2023_v44  ;;  %v1985_v43 = vmax.f32 %v1899_v53, 0.0 }
 0x3d2   :  { %v1905_v42 = vadd.f32 %v1904_v38, %v1552_v30  ;;  %v1986_v47 = vmax.f32 %v1901_v55, 0.0 }
 0x3d3   :  { %v1987_v45 = vmax.f32 %v1903_v33, 0.0 }
 0x3d4   :  { %v1988_v48 = vmax.f32 %v1905_v42, 0.0 }
 0x3d5   :  { %v2025_v49 = vpack.c.bf16 %v1987_v45, %v1985_v43 }
 0x3d6   :  { %v2026_v3 = vpack.c.bf16 %v1988_v48, %v1986_v47  ;;  %v1908_v56 = vpop.f32.mrb[84].mxu0 }
 0x3d7   :  { %v1909_v54 = vadd.f32 %v1908_v56, %v1557_v51  ;;  %v1910_v58 = vpop.f32.mrb[85].mxu0 }
 0x3d8   :  { %v1911_v61 = vadd.f32 %v1910_v58, %v1557_v51  ;;  %v1912_v0 = vpop.f32.mrb[86].mxu0  ;;  %2075 = vmatprep.subr.bf16.mxu1 %v2026_v3 }
 0x3d9   :  { %v1913_v1 = vadd.f32 %v1912_v0, %v1562_v60  ;;  %v1914_v7 = vpop.f32.mrb[87].mxu0  ;;  %2076 = vmatpush1.bf16.msra.mxu1 %v2025_v49  ;;  %v1989_v46 = vmax.f32 %v1909_v54, 0.0 }
 0x3da   :  { %v1915_v11 = vadd.f32 %v1914_v7, %v1562_v60  ;;  %v1990_v2 = vmax.f32 %v1911_v61, 0.0 }
 0x3db   :  { %v1991_v12 = vmax.f32 %v1913_v1, 0.0 }
 0x3dc   :  { %v1992_v13 = vmax.f32 %v1915_v11, 0.0 }
 0x3dd   :  { %v2027_v14 = vpack.c.bf16 %v1991_v12, %v1989_v46 }
 0x3de   :  { %v2028_v16 = vpack.c.bf16 %v1992_v13, %v1990_v2  ;;  %v1918_v17 = vpop.f32.mrb[88].mxu0 }
 0x3df   :  { %v1919_v18 = vadd.f32 %v1918_v17, %v1567_v15  ;;  %v1920_v19 = vpop.f32.mrb[89].mxu0 }
 0x3e0   :  { %v1921_v63 = vadd.f32 %v1920_v19, %v1567_v15  ;;  %v1922_v6 = vpop.f32.mrb[90].mxu0  ;;  %2077 = vmatprep.subr.bf16.mxu1 %v2028_v16 }
 0x3e1   :  { %v1923_v52 = vadd.f32 %v1922_v6, %v1572_v20  ;;  %v1924_v21 = vpop.f32.mrb[91].mxu0  ;;  %2078 = vmatpush1.bf16.msra.mxu1 %v2027_v14  ;;  %v1993_v25 = vmax.f32 %v1919_v18, 0.0 }
 0x3e2   :  { %v1925_v24 = vadd.f32 %v1924_v21, %v1572_v20  ;;  %v1994_v28 = vmax.f32 %v1921_v63, 0.0 }
 0x3e3   :  { %v1995_v26 = vmax.f32 %v1923_v52, 0.0 }
 0x3e4   :  { %v1996_v29 = vmax.f32 %v1925_v24, 0.0 }
 0x3e5   :  { %v2029_v5 = vpack.c.bf16 %v1995_v26, %v1993_v25 }
 0x3e6   :  { %v2030_v32 = vpack.c.bf16 %v1996_v29, %v1994_v28  ;;  %v1928_v34 = vpop.f32.mrb[92].mxu0 }
 0x3e7   :  { %v1929_v62 = vadd.f32 %v1928_v34, %v1577_v31  ;;  %v1930_v35 = vpop.f32.mrb[93].mxu0 }
 0x3e8   :  { %v1931_v37 = vadd.f32 %v1930_v35, %v1577_v31  ;;  %v1932_v9 = vpop.f32.mrb[94].mxu0  ;;  %2079 = vmatprep.subr.bf16.mxu1 %v2030_v32 }
 0x3e9   :  { %v1933_v39 = vadd.f32 %v1932_v9, %v1582_v36  ;;  %v1934_v57 = vpop.f32.mrb[95].mxu0  ;;  %2080 = vmatpush1.bf16.msra.mxu1 %v2029_v5  ;;  %v1997_v4 = vmax.f32 %v1929_v62, 0.0 }
 0x3ea   :  { %v1935_v40 = vadd.f32 %v1934_v57, %v1582_v36  ;;  %v1998_v8 = vmax.f32 %v1931_v37, 0.0 }
 0x3eb   :  { %v1999_v41 = vmax.f32 %v1933_v39, 0.0 }
 0x3ec   :  { %v2000_v44 = vmax.f32 %v1935_v40, 0.0 }
 0x3ed   :  { %v2031_v50 = vpack.c.bf16 %v1999_v41, %v1997_v4 }
 0x3ee   :  { %v2032_v22 = vpack.c.bf16 %v2000_v44, %v1998_v8 }
 0x3f0   :  { %2081 = vmatprep.subr.bf16.mxu1 %v2032_v22 }
 0x3f1   :  { %2082 = vmatpush1.bf16.msra.mxu1 %v2031_v50 }
 0x3f4   :  { %2084 = vmatmul.mubr.bf16.vlgmr.msra.gmra.mrb[96].mxu1 %v3083_v59 }
 0x4c7   :  { %v2085_v53 = vpop.f32.mrb[96].mxu1 }
 0x4c8   :  { %v2086_v23 = vadd.f32 %v2085_v53, %v2038_v27  ;;  %v2087_v30 = vpop.f32.mrb[97].mxu1 }
 0x4c9   :  { %v2088_v55 = vadd.f32 %v2087_v30, %v2038_v27  ;;  %v2089_v10 = vpop.f32.mrb[98].mxu1 }
 0x4ca   :  { %v2102_v33 = vrot.slane %v2086_v23, 4  ;;  %v2090_v38 = vpop.f32.mrb[99].mxu1 }
 0x4cb   :  { %v2103_v42 = vrot.slane %v2088_v55, 4 }
 0x4cc   :  { %2106 = vst [vmem:[#allocation2] sm:$0xf0] %v2102_v33 }
 0x4cd   :  { %2107 = vst [vmem:[#allocation2 + $0x8] sm:$0xf0] %v2103_v42 }
 0x4ce   :  { %2349 = shalt.err (!%p2346_p4)
}
 0x4cf   :  { %s2350_s2 = scalar_lea.hbm %s3109_s9, 256 }
 0x4d0   :  { %p2351_p5 = scmp.ne.s32.totalorder %s3109_s9, %s2350_s2  ;;  %p2354_p6 = scmp.lt.u32.totalorder %s2350_s2, %s3109_s9 }
 0x4d2   :  { %p2356_p7 = pnand %p2354_p6, %p2351_p5 }
 0x4d4   :  { %2359 = shalt.err (!%p2356_p7)
}
 0x4d5   :  { %2117 = dma.vmem_to_hbm [thread:$0]  %s2115_s7, 256, %s3109_s9, [#allocation3]  }
 0x4d6   :  { %2360 = dma.done.wait [#allocation3], 256  }
 0x4d7   :  { %2361 = vsyncadd [#allocation3], 4294967040 }
 0x4d8   :  { %2121 = vsyncpa [#allocation3], 1 }

</bundles_post_ra>
